<compile_context>
chip_gen: v7x
topology: tpu7x:2x2x1
jax: 0.10.0
libtpu: 0.0.40
codegen_flags: <defaults>
</compile_context>

<pallas_src>
import functools
import math

import jax
import jax.numpy as jnp
import numpy as np
from jax import lax
from jax.experimental import pallas as pl
from jax.experimental.pallas import tpu as pltpu


def _mha_kernel(q_ref, k_ref, v_ref,
                wq_ref, bq_ref, wk_ref, bk_ref, wv_ref, bv_ref,
                wo_ref, bo_ref,
                o_ref,
                k_heads, v_heads, heads_scr,
                *, n_heads, d_k):
    cd = wq_ref.dtype                      # compute (MXU operand) dtype
    # For the f32 parity path force accurate f32 matmuls; for bf16 operands the
    # MXU already accumulates exactly in f32, so precision is left default.
    prec = lax.Precision.HIGHEST if wq_ref.dtype == jnp.float32 else None

    # ---- K/V projections: once per batch element, cached in VMEM scratch ----
    @pl.when(pl.program_id(1) == 0)
    def _():
        k_all = jnp.dot(k_ref[0].astype(cd), wk_ref[...],
                        preferred_element_type=jnp.float32,
                        precision=prec) + bk_ref[...]
        v_all = jnp.dot(v_ref[0].astype(cd), wv_ref[...],
                        preferred_element_type=jnp.float32,
                        precision=prec) + bv_ref[...]
        # Per-head layout so inner query-tile steps only do leading-dim
        # indexing (no sub-128-lane re-slicing of K/V every step).
        for h in range(n_heads):
            sl = slice(h * d_k, (h + 1) * d_k)
            k_heads[h] = k_all[:, sl].astype(cd)
            v_heads[h] = v_all[:, sl].astype(cd)

    # ---- Q projection for this query tile (1/sqrt(d_k) folded into Wq/bq) ----
    q_all = jnp.dot(q_ref[0].astype(cd), wq_ref[...],
                    preferred_element_type=jnp.float32,
                    precision=prec) + bq_ref[...]

    for h in range(n_heads):               # static, small unrolled loop
        sl = slice(h * d_k, (h + 1) * d_k)
        q_h = q_all[:, sl].astype(cd)      # (TQ, d_k)
        k_h = k_heads[h]                   # (S,  d_k), cached
        v_h = v_heads[h]                   # (S,  d_k), cached

        # q_h @ k_h^T with the transpose folded into the MXU contraction.
        scores = lax.dot_general(q_h, k_h, (((1,), (1,)), ((), ())),
                                 preferred_element_type=jnp.float32,
                                 precision=prec)
        # TODO(synk): optional multiplicative `mask * scores` path not wired in
        # (the module's default forward uses mask=None).
        scores = scores - jnp.max(scores, axis=-1, keepdims=True)
        e = jnp.exp(scores)
        p = e / jnp.sum(e, axis=-1, keepdims=True)   # exact divide: parity w/ F.softmax
        head_h = jnp.dot(p.astype(cd), v_h,
                         preferred_element_type=jnp.float32, precision=prec)
        # Write into the (TQ, D) scratch at static lane offsets instead of
        # concatenating a Python list (== torch.cat(heads, -1) layout).
        heads_scr[:, sl] = head_h.astype(cd)

    out = jnp.dot(heads_scr[...], wo_ref[...],
                  preferred_element_type=jnp.float32,
                  precision=prec) + bo_ref[...]
    o_ref[0] = out.astype(o_ref.dtype)


def fuse_mha_params(wq, bq, wk, bk, wv, bv, wo, bo, *, compute_dtype=None):
    """One-time parameter prep (hoisted out of the per-call path).

    wq/wk/wv: (H, D, d_k) [in x out]; bq/bk/bv: (H, d_k);
    wo: (D, D) [in x out]; bo: (D,).
    Fuses the H per-head Linears into (D, D) matrices whose column block
    h*d_k:(h+1)*d_k is head h, folds 1/sqrt(d_k) into Wq/bq, and casts the
    matmul weights to `compute_dtype` (bf16 for the MXU-native fast path).
    Biases stay f32 (added after the f32-accumulated dot).
    """
    H, D, d_k = wq.shape
    cd = compute_dtype if compute_dtype is not None else wq.dtype
    scale = jnp.float32(1.0 / math.sqrt(d_k))

    wq_all = (jnp.transpose(wq, (1, 0, 2)).reshape(D, H * d_k) * scale).astype(cd)
    bq_all = (bq.reshape(1, H * d_k) * scale).astype(jnp.float32)
    wk_all = jnp.transpose(wk, (1, 0, 2)).reshape(D, H * d_k).astype(cd)
    bk_all = bk.reshape(1, H * d_k).astype(jnp.float32)
    wv_all = jnp.transpose(wv, (1, 0, 2)).reshape(D, H * d_k).astype(cd)
    bv_all = bv.reshape(1, H * d_k).astype(jnp.float32)
    wo_c = wo.astype(cd)
    bo2 = bo.reshape(1, D).astype(jnp.float32)
    return (wq_all, bq_all, wk_all, bk_all, wv_all, bv_all, wo_c, bo2)


def multi_head_attn_fused(queries, keys, values, fused_params, *, n_heads,
                          q_tile=None):
    """queries/keys/values: (B, S, D); fused_params from fuse_mha_params."""
    B, S, D = queries.shape
    assert D % n_heads == 0
    d_k = D // n_heads
    (wq_all, bq_all, wk_all, bk_all, wv_all, bv_all, wo_c, bo2) = fused_params
    cd = wq_all.dtype

    if q_tile is None:
        # 256 keeps per-step VMEM within v7x's 64 MiB/TC; v5e/v6e (128 MiB) can
        # afford 512 via the q_tile argument.
        q_tile = S if S <= 256 else 256
    assert S % q_tile == 0, "TODO(synk): ragged S (S % q_tile != 0) not handled"
    n_q = S // q_tile

    q_spec = pl.BlockSpec((1, q_tile, D), lambda b, qi: (b, qi, 0))
    kv_spec = pl.BlockSpec((1, S, D), lambda b, qi: (b, 0, 0))      # fetched once per b
    w_spec = pl.BlockSpec((D, D), lambda b, qi: (0, 0))             # grid-invariant
    b_spec = pl.BlockSpec((1, D), lambda b, qi: (0, 0))             # grid-invariant
    out_spec = pl.BlockSpec((1, q_tile, D), lambda b, qi: (b, qi, 0))

    kernel = functools.partial(_mha_kernel, n_heads=n_heads, d_k=d_k)

    return pl.pallas_call(
        kernel,
        out_shape=jax.ShapeDtypeStruct((B, S, D), queries.dtype),
        grid_spec=pltpu.PrefetchScalarGridSpec(
            num_scalar_prefetch=0,
            grid=(B, n_q),
            in_specs=[q_spec, kv_spec, kv_spec,
                      w_spec, b_spec, w_spec, b_spec, w_spec, b_spec,
                      w_spec, b_spec],
            out_specs=out_spec,
            scratch_shapes=[
                pltpu.VMEM((n_heads, S, d_k), cd),   # cached projected K
                pltpu.VMEM((n_heads, S, d_k), cd),   # cached projected V
                pltpu.VMEM((q_tile, D), cd),         # concatenated heads
            ]),
        compiler_params=pltpu.CompilerParams(
            # qi must be sequential so the K/V cache is filled at qi==0 before
            # the remaining query tiles of the same batch element run.
            dimension_semantics=("parallel", "arbitrary"),
            # 48 MiB leaves headroom under v7x's 64 MiB per-TC VMEM.
            vmem_limit_bytes=48 * 1024 * 1024),
    )(queries, keys, values,
      wq_all, bq_all, wk_all, bk_all, wv_all, bv_all, wo_c, bo2)


def multi_head_attn(queries, keys, values,
                    wq, bq, wk, bk, wv, bv, wo, bo, *,
                    q_tile=None, compute_dtype=None):
    """Convenience wrapper: per-call parameter fusion + fused kernel."""
    H = wq.shape[0]
    params = fuse_mha_params(wq, bq, wk, bk, wv, bv, wo, bo,
                             compute_dtype=compute_dtype)
    return multi_head_attn_fused(queries, keys, values, params,
                                 n_heads=H, q_tile=q_tile)


def _reference_mha(queries, keys, values, wq, bq, wk, bk, wv, bv, wo, bo):
    # Pure-JAX reference matching the PyTorch module semantics, computed with
    # HIGHEST matmul precision so the parity check is accurate-vs-accurate.
    hp = lax.Precision.HIGHEST
    q = jnp.einsum('bsd,hde->bhse', queries, wq, precision=hp) + bq[None, :, None, :]
    k = jnp.einsum('bsd,hde->bhse', keys, wk, precision=hp) + bk[None, :, None, :]
    v = jnp.einsum('bsd,hde->bhse', values, wv, precision=hp) + bv[None, :, None, :]
    d_k = q.shape[-1]
    scores = jnp.einsum('bhqe,bhke->bhqk', q, k, precision=hp) / math.sqrt(d_k)
    p = jax.nn.softmax(scores, axis=-1)
    heads = jnp.einsum('bhqk,bhke->bhqe', p, v, precision=hp)      # (B, H, S, d_v)
    B, H, S, dv = heads.shape
    concat = jnp.transpose(heads, (0, 2, 1, 3)).reshape(B, S, H * dv)
    return jnp.einsum('bsd,de->bse', concat, wo, precision=hp) + bo


if __name__ == "__main__":
    B, S, D, H = 2, 8, 32, 4
    d_k = D // H

    key = jax.random.PRNGKey(0)
    ks = jax.random.split(key, 11)
    queries = jax.random.normal(ks[0], (B, S, D), dtype=jnp.float32)
    keys_in = jax.random.normal(ks[1], (B, S, D), dtype=jnp.float32)
    values = jax.random.normal(ks[2], (B, S, D), dtype=jnp.float32)

    scale = 1.0 / math.sqrt(D)
    wq = jax.random.normal(ks[3], (H, D, d_k), dtype=jnp.float32) * scale
    bq = jax.random.normal(ks[4], (H, d_k), dtype=jnp.float32) * scale
    wk = jax.random.normal(ks[5], (H, D, d_k), dtype=jnp.float32) * scale
    bk = jax.random.normal(ks[6], (H, d_k), dtype=jnp.float32) * scale
    wv = jax.random.normal(ks[7], (H, D, d_k), dtype=jnp.float32) * scale
    bv = jax.random.normal(ks[8], (H, d_k), dtype=jnp.float32) * scale
    wo = jax.random.normal(ks[9], (D, D), dtype=jnp.float32) * scale
    bo = jax.random.normal(ks[10], (D,), dtype=jnp.float32) * scale

    ref = _reference_mha(queries, keys_in, values,
                         wq, bq, wk, bk, wv, bv, wo, bo)

    # 1) f32 parity path: exact softmax divide + accurate matmuls.
    params_f32 = fuse_mha_params(wq, bq, wk, bk, wv, bv, wo, bo)
    out_f32 = multi_head_attn_fused(queries, keys_in, values, params_f32, n_heads=H)
    out_f32 = jax.block_until_ready(out_f32)
    np.testing.assert_allclose(np.asarray(out_f32), np.asarray(ref),
                               rtol=5e-4, atol=5e-4)

    # 2) bf16 MXU fast path (production config per perf review): bf16 operands,
    #    f32 accumulation.  Tolerance reflects bf16 operand rounding.
    params_bf16 = fuse_mha_params(wq, bq, wk, bk, wv, bv, wo, bo,
                                  compute_dtype=jnp.bfloat16)
    out_bf16 = multi_head_attn_fused(queries, keys_in, values, params_bf16, n_heads=H)
    out_bf16 = jax.block_until_ready(out_bf16)
    np.testing.assert_allclose(np.asarray(out_bf16, dtype=np.float32),
                               np.asarray(ref), rtol=8e-2, atol=8e-2)

    print("KERNEL_OK")
</pallas_src>

<mosaic_0001>
module attributes {stable_mosaic.version = 11 : i64} {
  func.func @_mha_kernel(%arg0: i32, %arg1: i32, %arg2: memref<1x8x32xf32, #tpu.memory_space<vmem>>, %arg3: memref<1x8x32xf32, #tpu.memory_space<vmem>>, %arg4: memref<1x8x32xf32, #tpu.memory_space<vmem>>, %arg5: memref<32x32xf32, #tpu.memory_space<vmem>>, %arg6: memref<1x32xf32, #tpu.memory_space<vmem>>, %arg7: memref<32x32xf32, #tpu.memory_space<vmem>>, %arg8: memref<1x32xf32, #tpu.memory_space<vmem>>, %arg9: memref<32x32xf32, #tpu.memory_space<vmem>>, %arg10: memref<1x32xf32, #tpu.memory_space<vmem>>, %arg11: memref<32x32xf32, #tpu.memory_space<vmem>>, %arg12: memref<1x32xf32, #tpu.memory_space<vmem>>, %arg13: memref<1x8x32xf32, #tpu.memory_space<vmem>>, %arg14: memref<4x8x8xf32, #tpu.memory_space<vmem>>, %arg15: memref<4x8x8xf32, #tpu.memory_space<vmem>>, %arg16: memref<8x32xf32, #tpu.memory_space<vmem>>) attributes {dimension_semantics = [#tpu.dimension_semantics<parallel>, #tpu.dimension_semantics<arbitrary>], iteration_bounds = array<i64: 2, 1>, scalar_prefetch = 0 : i64, scratch_operands = 3 : i64, tpu.core_type = #tpu.core_type<tc>, window_params = [{transform_indices = @transform_0, window_bounds = array<i64: 1, 8, 32>}, {transform_indices = @transform_1, window_bounds = array<i64: 1, 8, 32>}, {transform_indices = @transform_2, window_bounds = array<i64: 1, 8, 32>}, {pipeline_mode = #tpu.pipeline_mode<synchronous>, transform_indices = @transform_3, window_bounds = array<i64: 32, 32>}, {pipeline_mode = #tpu.pipeline_mode<synchronous>, transform_indices = @transform_4, window_bounds = array<i64: 1, 32>}, {pipeline_mode = #tpu.pipeline_mode<synchronous>, transform_indices = @transform_5, window_bounds = array<i64: 32, 32>}, {pipeline_mode = #tpu.pipeline_mode<synchronous>, transform_indices = @transform_6, window_bounds = array<i64: 1, 32>}, {pipeline_mode = #tpu.pipeline_mode<synchronous>, transform_indices = @transform_7, window_bounds = array<i64: 32, 32>}, {pipeline_mode = #tpu.pipeline_mode<synchronous>, transform_indices = @transform_8, window_bounds = array<i64: 1, 32>}, {pipeline_mode = #tpu.pipeline_mode<synchronous>, transform_indices = @transform_9, window_bounds = array<i64: 32, 32>}, {pipeline_mode = #tpu.pipeline_mode<synchronous>, transform_indices = @transform_10, window_bounds = array<i64: 1, 32>}, {transform_indices = @transform_11, window_bounds = array<i64: 1, 8, 32>}]} {
    %c0_i32 = arith.constant 0 : i32
    %0 = arith.cmpi eq, %arg1, %c0_i32 : i32
    %1 = arith.extui %0 : i1 to i32
    %c0_i32_0 = arith.constant 0 : i32
    %2 = arith.cmpi ne, %1, %c0_i32_0 : i32
    scf.if %2 {
      %c0_59 = arith.constant 0 : index
      %c0_60 = arith.constant 0 : index
      %c0_61 = arith.constant 0 : index
      %87 = vector.load %arg3[%c0_59, %c0_60, %c0_61] : memref<1x8x32xf32, #tpu.memory_space<vmem>>, vector<1x8x32xf32>
      %88 = vector.shape_cast %87 : vector<1x8x32xf32> to vector<8x32xf32>
      %c0_62 = arith.constant 0 : index
      %c0_63 = arith.constant 0 : index
      %89 = vector.load %arg7[%c0_62, %c0_63] : memref<32x32xf32, #tpu.memory_space<vmem>>, vector<32x32xf32>
      %cst_64 = arith.constant dense<0.000000e+00> : vector<8x32xf32>
      %90 = tpu.matmul %88, %89, %cst_64 {dimension_numbers = #tpu.dot_dimension_numbers<[1], [0], [0], [1], [0, 0, 1, 1], [], []>, precision = #tpu.contract_precision<fp32>} : vector<8x32xf32>, vector<32x32xf32>, vector<8x32xf32> -> vector<8x32xf32>
      %c0_65 = arith.constant 0 : index
      %c0_66 = arith.constant 0 : index
      %91 = vector.load %arg8[%c0_65, %c0_66] : memref<1x32xf32, #tpu.memory_space<vmem>>, vector<1x32xf32>
      %92 = vector.broadcast %91 : vector<1x32xf32> to vector<8x32xf32>
      %93 = arith.addf %90, %92 : vector<8x32xf32>
      %c0_67 = arith.constant 0 : index
      %c0_68 = arith.constant 0 : index
      %c0_69 = arith.constant 0 : index
      %94 = vector.load %arg4[%c0_67, %c0_68, %c0_69] : memref<1x8x32xf32, #tpu.memory_space<vmem>>, vector<1x8x32xf32>
      %95 = vector.shape_cast %94 : vector<1x8x32xf32> to vector<8x32xf32>
      %c0_70 = arith.constant 0 : index
      %c0_71 = arith.constant 0 : index
      %96 = vector.load %arg9[%c0_70, %c0_71] : memref<32x32xf32, #tpu.memory_space<vmem>>, vector<32x32xf32>
      %cst_72 = arith.constant dense<0.000000e+00> : vector<8x32xf32>
      %97 = tpu.matmul %95, %96, %cst_72 {dimension_numbers = #tpu.dot_dimension_numbers<[1], [0], [0], [1], [0, 0, 1, 1], [], []>, precision = #tpu.contract_precision<fp32>} : vector<8x32xf32>, vector<32x32xf32>, vector<8x32xf32> -> vector<8x32xf32>
      %c0_73 = arith.constant 0 : index
      %c0_74 = arith.constant 0 : index
      %98 = vector.load %arg10[%c0_73, %c0_74] : memref<1x32xf32, #tpu.memory_space<vmem>>, vector<1x32xf32>
      %99 = vector.broadcast %98 : vector<1x32xf32> to vector<8x32xf32>
      %100 = arith.addf %97, %99 : vector<8x32xf32>
      %101 = vector.extract_strided_slice %93 {offsets = [0, 0], sizes = [8, 8], strides = [1, 1]} : vector<8x32xf32> to vector<8x8xf32>
      %c0_75 = arith.constant 0 : index
      %c0_76 = arith.constant 0 : index
      %c0_77 = arith.constant 0 : index
      %102 = vector.load %arg14[%c0_75, %c0_76, %c0_77] : memref<4x8x8xf32, #tpu.memory_space<vmem>>, vector<1x8x8xf32>
      %103 = vector.shape_cast %102 : vector<1x8x8xf32> to vector<8x8xf32>
      %104 = vector.shape_cast %101 : vector<8x8xf32> to vector<1x8x8xf32>
      tpu.vector_store %arg14[%c0_75, %c0_76, %c0_77], %104 {strides = array<i32>} : memref<4x8x8xf32, #tpu.memory_space<vmem>>, vector<1x8x8xf32>,
      %105 = vector.extract_strided_slice %100 {offsets = [0, 0], sizes = [8, 8], strides = [1, 1]} : vector<8x32xf32> to vector<8x8xf32>
      %c0_78 = arith.constant 0 : index
      %c0_79 = arith.constant 0 : index
      %c0_80 = arith.constant 0 : index
      %106 = vector.load %arg15[%c0_78, %c0_79, %c0_80] : memref<4x8x8xf32, #tpu.memory_space<vmem>>, vector<1x8x8xf32>
      %107 = vector.shape_cast %106 : vector<1x8x8xf32> to vector<8x8xf32>
      %108 = vector.shape_cast %105 : vector<8x8xf32> to vector<1x8x8xf32>
      tpu.vector_store %arg15[%c0_78, %c0_79, %c0_80], %108 {strides = array<i32>} : memref<4x8x8xf32, #tpu.memory_space<vmem>>, vector<1x8x8xf32>,
      %109 = vector.extract_strided_slice %93 {offsets = [0, 8], sizes = [8, 8], strides = [1, 1]} : vector<8x32xf32> to vector<8x8xf32>
      %c1_81 = arith.constant 1 : index
      %c0_82 = arith.constant 0 : index
      %c0_83 = arith.constant 0 : index
      %110 = vector.load %arg14[%c1_81, %c0_82, %c0_83] : memref<4x8x8xf32, #tpu.memory_space<vmem>>, vector<1x8x8xf32>
      %111 = vector.shape_cast %110 : vector<1x8x8xf32> to vector<8x8xf32>
      %112 = vector.shape_cast %109 : vector<8x8xf32> to vector<1x8x8xf32>
      tpu.vector_store %arg14[%c1_81, %c0_82, %c0_83], %112 {strides = array<i32>} : memref<4x8x8xf32, #tpu.memory_space<vmem>>, vector<1x8x8xf32>,
      %113 = vector.extract_strided_slice %100 {offsets = [0, 8], sizes = [8, 8], strides = [1, 1]} : vector<8x32xf32> to vector<8x8xf32>
      %c1_84 = arith.constant 1 : index
      %c0_85 = arith.constant 0 : index
      %c0_86 = arith.constant 0 : index
      %114 = vector.load %arg15[%c1_84, %c0_85, %c0_86] : memref<4x8x8xf32, #tpu.memory_space<vmem>>, vector<1x8x8xf32>
      %115 = vector.shape_cast %114 : vector<1x8x8xf32> to vector<8x8xf32>
      %116 = vector.shape_cast %113 : vector<8x8xf32> to vector<1x8x8xf32>
      tpu.vector_store %arg15[%c1_84, %c0_85, %c0_86], %116 {strides = array<i32>} : memref<4x8x8xf32, #tpu.memory_space<vmem>>, vector<1x8x8xf32>,
      %117 = vector.extract_strided_slice %93 {offsets = [0, 16], sizes = [8, 8], strides = [1, 1]} : vector<8x32xf32> to vector<8x8xf32>
      %c2_87 = arith.constant 2 : index
      %c0_88 = arith.constant 0 : index
      %c0_89 = arith.constant 0 : index
      %118 = vector.load %arg14[%c2_87, %c0_88, %c0_89] : memref<4x8x8xf32, #tpu.memory_space<vmem>>, vector<1x8x8xf32>
      %119 = vector.shape_cast %118 : vector<1x8x8xf32> to vector<8x8xf32>
      %120 = vector.shape_cast %117 : vector<8x8xf32> to vector<1x8x8xf32>
      tpu.vector_store %arg14[%c2_87, %c0_88, %c0_89], %120 {strides = array<i32>} : memref<4x8x8xf32, #tpu.memory_space<vmem>>, vector<1x8x8xf32>,
      %121 = vector.extract_strided_slice %100 {offsets = [0, 16], sizes = [8, 8], strides = [1, 1]} : vector<8x32xf32> to vector<8x8xf32>
      %c2_90 = arith.constant 2 : index
      %c0_91 = arith.constant 0 : index
      %c0_92 = arith.constant 0 : index
      %122 = vector.load %arg15[%c2_90, %c0_91, %c0_92] : memref<4x8x8xf32, #tpu.memory_space<vmem>>, vector<1x8x8xf32>
      %123 = vector.shape_cast %122 : vector<1x8x8xf32> to vector<8x8xf32>
      %124 = vector.shape_cast %121 : vector<8x8xf32> to vector<1x8x8xf32>
      tpu.vector_store %arg15[%c2_90, %c0_91, %c0_92], %124 {strides = array<i32>} : memref<4x8x8xf32, #tpu.memory_space<vmem>>, vector<1x8x8xf32>,
      %125 = vector.extract_strided_slice %93 {offsets = [0, 24], sizes = [8, 8], strides = [1, 1]} : vector<8x32xf32> to vector<8x8xf32>
      %c3_93 = arith.constant 3 : index
      %c0_94 = arith.constant 0 : index
      %c0_95 = arith.constant 0 : index
      %126 = vector.load %arg14[%c3_93, %c0_94, %c0_95] : memref<4x8x8xf32, #tpu.memory_space<vmem>>, vector<1x8x8xf32>
      %127 = vector.shape_cast %126 : vector<1x8x8xf32> to vector<8x8xf32>
      %128 = vector.shape_cast %125 : vector<8x8xf32> to vector<1x8x8xf32>
      tpu.vector_store %arg14[%c3_93, %c0_94, %c0_95], %128 {strides = array<i32>} : memref<4x8x8xf32, #tpu.memory_space<vmem>>, vector<1x8x8xf32>,
      %129 = vector.extract_strided_slice %100 {offsets = [0, 24], sizes = [8, 8], strides = [1, 1]} : vector<8x32xf32> to vector<8x8xf32>
      %c3_96 = arith.constant 3 : index
      %c0_97 = arith.constant 0 : index
      %c0_98 = arith.constant 0 : index
      %130 = vector.load %arg15[%c3_96, %c0_97, %c0_98] : memref<4x8x8xf32, #tpu.memory_space<vmem>>, vector<1x8x8xf32>
      %131 = vector.shape_cast %130 : vector<1x8x8xf32> to vector<8x8xf32>
      %132 = vector.shape_cast %129 : vector<8x8xf32> to vector<1x8x8xf32>
      tpu.vector_store %arg15[%c3_96, %c0_97, %c0_98], %132 {strides = array<i32>} : memref<4x8x8xf32, #tpu.memory_space<vmem>>, vector<1x8x8xf32>,
    } else {
    }
    %c0 = arith.constant 0 : index
    %c0_1 = arith.constant 0 : index
    %c0_2 = arith.constant 0 : index
    %3 = vector.load %arg2[%c0, %c0_1, %c0_2] : memref<1x8x32xf32, #tpu.memory_space<vmem>>, vector<1x8x32xf32>
    %4 = vector.shape_cast %3 : vector<1x8x32xf32> to vector<8x32xf32>
    %c0_3 = arith.constant 0 : index
    %c0_4 = arith.constant 0 : index
    %5 = vector.load %arg5[%c0_3, %c0_4] : memref<32x32xf32, #tpu.memory_space<vmem>>, vector<32x32xf32>
    %cst = arith.constant dense<0.000000e+00> : vector<8x32xf32>
    %6 = tpu.matmul %4, %5, %cst {dimension_numbers = #tpu.dot_dimension_numbers<[1], [0], [0], [1], [0, 0, 1, 1], [], []>, precision = #tpu.contract_precision<fp32>} : vector<8x32xf32>, vector<32x32xf32>, vector<8x32xf32> -> vector<8x32xf32>
    %c0_5 = arith.constant 0 : index
    %c0_6 = arith.constant 0 : index
    %7 = vector.load %arg6[%c0_5, %c0_6] : memref<1x32xf32, #tpu.memory_space<vmem>>, vector<1x32xf32>
    %8 = vector.broadcast %7 : vector<1x32xf32> to vector<8x32xf32>
    %9 = arith.addf %6, %8 : vector<8x32xf32>
    %10 = vector.extract_strided_slice %9 {offsets = [0, 0], sizes = [8, 8], strides = [1, 1]} : vector<8x32xf32> to vector<8x8xf32>
    %c0_7 = arith.constant 0 : index
    %c0_8 = arith.constant 0 : index
    %c0_9 = arith.constant 0 : index
    %11 = vector.load %arg14[%c0_7, %c0_8, %c0_9] : memref<4x8x8xf32, #tpu.memory_space<vmem>>, vector<1x8x8xf32>
    %12 = vector.shape_cast %11 : vector<1x8x8xf32> to vector<8x8xf32>
    %c0_10 = arith.constant 0 : index
    %c0_11 = arith.constant 0 : index
    %c0_12 = arith.constant 0 : index
    %13 = vector.load %arg15[%c0_10, %c0_11, %c0_12] : memref<4x8x8xf32, #tpu.memory_space<vmem>>, vector<1x8x8xf32>
    %14 = vector.shape_cast %13 : vector<1x8x8xf32> to vector<8x8xf32>
    %cst_13 = arith.constant dense<0.000000e+00> : vector<8x8xf32>
    %15 = tpu.matmul %10, %12, %cst_13 {dimension_numbers = #tpu.dot_dimension_numbers<[1], [1], [0], [0], [0, 0, 1, 0], [], []>, precision = #tpu.contract_precision<fp32>} : vector<8x8xf32>, vector<8x8xf32>, vector<8x8xf32> -> vector<8x8xf32>
    %cst_14 = arith.constant dense<0xFF800000> : vector<8xf32>
    %16 = vector.multi_reduction <maximumf>, %15, %cst_14 [1] : vector<8x8xf32> to vector<8xf32>
    %17 = vector.shape_cast %16 : vector<8xf32> to vector<8x1xf32>
    %18 = vector.broadcast %17 : vector<8x1xf32> to vector<8x8xf32>
    %19 = arith.subf %15, %18 : vector<8x8xf32>
    %20 = math.exp %19 : vector<8x8xf32>
    %cst_15 = arith.constant dense<0.000000e+00> : vector<8xf32>
    %21 = vector.multi_reduction <add>, %20, %cst_15 [1] : vector<8x8xf32> to vector<8xf32>
    %22 = vector.shape_cast %21 : vector<8xf32> to vector<8x1xf32>
    %23 = vector.broadcast %22 : vector<8x1xf32> to vector<8x8xf32>
    %24 = arith.divf %20, %23 : vector<8x8xf32>
    %cst_16 = arith.constant dense<0.000000e+00> : vector<8x8xf32>
    %25 = tpu.matmul %24, %14, %cst_16 {dimension_numbers = #tpu.dot_dimension_numbers<[1], [0], [0], [1], [0, 0, 1, 1], [], []>, precision = #tpu.contract_precision<fp32>} : vector<8x8xf32>, vector<8x8xf32>, vector<8x8xf32> -> vector<8x8xf32>
    %c0_17 = arith.constant 0 : index
    %c0_18 = arith.constant 0 : index
    %26 = vector.load %arg16[%c0_17, %c0_18] : memref<8x32xf32, #tpu.memory_space<vmem>>, vector<8x8xf32>
    tpu.vector_store %arg16[%c0_17, %c0_18], %25 {strides = array<i32>} : memref<8x32xf32, #tpu.memory_space<vmem>>, vector<8x8xf32>,
    %27 = vector.extract_strided_slice %9 {offsets = [0, 8], sizes = [8, 8], strides = [1, 1]} : vector<8x32xf32> to vector<8x8xf32>
    %c1 = arith.constant 1 : index
    %c0_19 = arith.constant 0 : index
    %c0_20 = arith.constant 0 : index
    %28 = vector.load %arg14[%c1, %c0_19, %c0_20] : memref<4x8x8xf32, #tpu.memory_space<vmem>>, vector<1x8x8xf32>
    %29 = vector.shape_cast %28 : vector<1x8x8xf32> to vector<8x8xf32>
    %c1_21 = arith.constant 1 : index
    %c0_22 = arith.constant 0 : index
    %c0_23 = arith.constant 0 : index
    %30 = vector.load %arg15[%c1_21, %c0_22, %c0_23] : memref<4x8x8xf32, #tpu.memory_space<vmem>>, vector<1x8x8xf32>
    %31 = vector.shape_cast %30 : vector<1x8x8xf32> to vector<8x8xf32>
    %cst_24 = arith.constant dense<0.000000e+00> : vector<8x8xf32>
    %32 = tpu.matmul %27, %29, %cst_24 {dimension_numbers = #tpu.dot_dimension_numbers<[1], [1], [0], [0], [0, 0, 1, 0], [], []>, precision = #tpu.contract_precision<fp32>} : vector<8x8xf32>, vector<8x8xf32>, vector<8x8xf32> -> vector<8x8xf32>
    %cst_25 = arith.constant dense<0xFF800000> : vector<8xf32>
    %33 = vector.multi_reduction <maximumf>, %32, %cst_25 [1] : vector<8x8xf32> to vector<8xf32>
    %34 = vector.shape_cast %33 : vector<8xf32> to vector<8x1xf32>
    %35 = vector.broadcast %34 : vector<8x1xf32> to vector<8x8xf32>
    %36 = arith.subf %32, %35 : vector<8x8xf32>
    %37 = math.exp %36 : vector<8x8xf32>
    %cst_26 = arith.constant dense<0.000000e+00> : vector<8xf32>
    %38 = vector.multi_reduction <add>, %37, %cst_26 [1] : vector<8x8xf32> to vector<8xf32>
    %39 = vector.shape_cast %38 : vector<8xf32> to vector<8x1xf32>
    %40 = vector.broadcast %39 : vector<8x1xf32> to vector<8x8xf32>
    %41 = arith.divf %37, %40 : vector<8x8xf32>
    %cst_27 = arith.constant dense<0.000000e+00> : vector<8x8xf32>
    %42 = tpu.matmul %41, %31, %cst_27 {dimension_numbers = #tpu.dot_dimension_numbers<[1], [0], [0], [1], [0, 0, 1, 1], [], []>, precision = #tpu.contract_precision<fp32>} : vector<8x8xf32>, vector<8x8xf32>, vector<8x8xf32> -> vector<8x8xf32>
    %c0_28 = arith.constant 0 : index
    %c8 = arith.constant 8 : index
    %43 = vector.load %arg16[%c0_28, %c8] : memref<8x32xf32, #tpu.memory_space<vmem>>, vector<8x8xf32>
    tpu.vector_store %arg16[%c0_28, %c8], %42 {strides = array<i32>} : memref<8x32xf32, #tpu.memory_space<vmem>>, vector<8x8xf32>,
    %44 = vector.extract_strided_slice %9 {offsets = [0, 16], sizes = [8, 8], strides = [1, 1]} : vector<8x32xf32> to vector<8x8xf32>
    %c2 = arith.constant 2 : index
    %c0_29 = arith.constant 0 : index
    %c0_30 = arith.constant 0 : index
    %45 = vector.load %arg14[%c2, %c0_29, %c0_30] : memref<4x8x8xf32, #tpu.memory_space<vmem>>, vector<1x8x8xf32>
    %46 = vector.shape_cast %45 : vector<1x8x8xf32> to vector<8x8xf32>
    %c2_31 = arith.constant 2 : index
    %c0_32 = arith.constant 0 : index
    %c0_33 = arith.constant 0 : index
    %47 = vector.load %arg15[%c2_31, %c0_32, %c0_33] : memref<4x8x8xf32, #tpu.memory_space<vmem>>, vector<1x8x8xf32>
    %48 = vector.shape_cast %47 : vector<1x8x8xf32> to vector<8x8xf32>
    %cst_34 = arith.constant dense<0.000000e+00> : vector<8x8xf32>
    %49 = tpu.matmul %44, %46, %cst_34 {dimension_numbers = #tpu.dot_dimension_numbers<[1], [1], [0], [0], [0, 0, 1, 0], [], []>, precision = #tpu.contract_precision<fp32>} : vector<8x8xf32>, vector<8x8xf32>, vector<8x8xf32> -> vector<8x8xf32>
    %cst_35 = arith.constant dense<0xFF800000> : vector<8xf32>
    %50 = vector.multi_reduction <maximumf>, %49, %cst_35 [1] : vector<8x8xf32> to vector<8xf32>
    %51 = vector.shape_cast %50 : vector<8xf32> to vector<8x1xf32>
    %52 = vector.broadcast %51 : vector<8x1xf32> to vector<8x8xf32>
    %53 = arith.subf %49, %52 : vector<8x8xf32>
    %54 = math.exp %53 : vector<8x8xf32>
    %cst_36 = arith.constant dense<0.000000e+00> : vector<8xf32>
    %55 = vector.multi_reduction <add>, %54, %cst_36 [1] : vector<8x8xf32> to vector<8xf32>
    %56 = vector.shape_cast %55 : vector<8xf32> to vector<8x1xf32>
    %57 = vector.broadcast %56 : vector<8x1xf32> to vector<8x8xf32>
    %58 = arith.divf %54, %57 : vector<8x8xf32>
    %cst_37 = arith.constant dense<0.000000e+00> : vector<8x8xf32>
    %59 = tpu.matmul %58, %48, %cst_37 {dimension_numbers = #tpu.dot_dimension_numbers<[1], [0], [0], [1], [0, 0, 1, 1], [], []>, precision = #tpu.contract_precision<fp32>} : vector<8x8xf32>, vector<8x8xf32>, vector<8x8xf32> -> vector<8x8xf32>
    %c0_38 = arith.constant 0 : index
    %c16 = arith.constant 16 : index
    %60 = vector.load %arg16[%c0_38, %c16] : memref<8x32xf32, #tpu.memory_space<vmem>>, vector<8x8xf32>
    tpu.vector_store %arg16[%c0_38, %c16], %59 {strides = array<i32>} : memref<8x32xf32, #tpu.memory_space<vmem>>, vector<8x8xf32>,
    %61 = vector.extract_strided_slice %9 {offsets = [0, 24], sizes = [8, 8], strides = [1, 1]} : vector<8x32xf32> to vector<8x8xf32>
    %c3 = arith.constant 3 : index
    %c0_39 = arith.constant 0 : index
    %c0_40 = arith.constant 0 : index
    %62 = vector.load %arg14[%c3, %c0_39, %c0_40] : memref<4x8x8xf32, #tpu.memory_space<vmem>>, vector<1x8x8xf32>
    %63 = vector.shape_cast %62 : vector<1x8x8xf32> to vector<8x8xf32>
    %c3_41 = arith.constant 3 : index
    %c0_42 = arith.constant 0 : index
    %c0_43 = arith.constant 0 : index
    %64 = vector.load %arg15[%c3_41, %c0_42, %c0_43] : memref<4x8x8xf32, #tpu.memory_space<vmem>>, vector<1x8x8xf32>
    %65 = vector.shape_cast %64 : vector<1x8x8xf32> to vector<8x8xf32>
    %cst_44 = arith.constant dense<0.000000e+00> : vector<8x8xf32>
    %66 = tpu.matmul %61, %63, %cst_44 {dimension_numbers = #tpu.dot_dimension_numbers<[1], [1], [0], [0], [0, 0, 1, 0], [], []>, precision = #tpu.contract_precision<fp32>} : vector<8x8xf32>, vector<8x8xf32>, vector<8x8xf32> -> vector<8x8xf32>
    %cst_45 = arith.constant dense<0xFF800000> : vector<8xf32>
    %67 = vector.multi_reduction <maximumf>, %66, %cst_45 [1] : vector<8x8xf32> to vector<8xf32>
    %68 = vector.shape_cast %67 : vector<8xf32> to vector<8x1xf32>
    %69 = vector.broadcast %68 : vector<8x1xf32> to vector<8x8xf32>
    %70 = arith.subf %66, %69 : vector<8x8xf32>
    %71 = math.exp %70 : vector<8x8xf32>
    %cst_46 = arith.constant dense<0.000000e+00> : vector<8xf32>
    %72 = vector.multi_reduction <add>, %71, %cst_46 [1] : vector<8x8xf32> to vector<8xf32>
    %73 = vector.shape_cast %72 : vector<8xf32> to vector<8x1xf32>
    %74 = vector.broadcast %73 : vector<8x1xf32> to vector<8x8xf32>
    %75 = arith.divf %71, %74 : vector<8x8xf32>
    %cst_47 = arith.constant dense<0.000000e+00> : vector<8x8xf32>
    %76 = tpu.matmul %75, %65, %cst_47 {dimension_numbers = #tpu.dot_dimension_numbers<[1], [0], [0], [1], [0, 0, 1, 1], [], []>, precision = #tpu.contract_precision<fp32>} : vector<8x8xf32>, vector<8x8xf32>, vector<8x8xf32> -> vector<8x8xf32>
    %c0_48 = arith.constant 0 : index
    %c24 = arith.constant 24 : index
    %77 = vector.load %arg16[%c0_48, %c24] : memref<8x32xf32, #tpu.memory_space<vmem>>, vector<8x8xf32>
    tpu.vector_store %arg16[%c0_48, %c24], %76 {strides = array<i32>} : memref<8x32xf32, #tpu.memory_space<vmem>>, vector<8x8xf32>,
    %c0_49 = arith.constant 0 : index
    %c0_50 = arith.constant 0 : index
    %78 = vector.load %arg16[%c0_49, %c0_50] : memref<8x32xf32, #tpu.memory_space<vmem>>, vector<8x32xf32>
    %c0_51 = arith.constant 0 : index
    %c0_52 = arith.constant 0 : index
    %79 = vector.load %arg11[%c0_51, %c0_52] : memref<32x32xf32, #tpu.memory_space<vmem>>, vector<32x32xf32>
    %cst_53 = arith.constant dense<0.000000e+00> : vector<8x32xf32>
    %80 = tpu.matmul %78, %79, %cst_53 {dimension_numbers = #tpu.dot_dimension_numbers<[1], [0], [0], [1], [0, 0, 1, 1], [], []>, precision = #tpu.contract_precision<fp32>} : vector<8x32xf32>, vector<32x32xf32>, vector<8x32xf32> -> vector<8x32xf32>
    %c0_54 = arith.constant 0 : index
    %c0_55 = arith.constant 0 : index
    %81 = vector.load %arg12[%c0_54, %c0_55] : memref<1x32xf32, #tpu.memory_space<vmem>>, vector<1x32xf32>
    %82 = vector.broadcast %81 : vector<1x32xf32> to vector<8x32xf32>
    %83 = arith.addf %80, %82 : vector<8x32xf32>
    %c0_56 = arith.constant 0 : index
    %c0_57 = arith.constant 0 : index
    %c0_58 = arith.constant 0 : index
    %84 = vector.load %arg13[%c0_56, %c0_57, %c0_58] : memref<1x8x32xf32, #tpu.memory_space<vmem>>, vector<1x8x32xf32>
    %85 = vector.shape_cast %84 : vector<1x8x32xf32> to vector<8x32xf32>
    %86 = vector.shape_cast %83 : vector<8x32xf32> to vector<1x8x32xf32>
    tpu.vector_store %arg13[%c0_56, %c0_57, %c0_58], %86 {strides = array<i32>} : memref<1x8x32xf32, #tpu.memory_space<vmem>>, vector<1x8x32xf32>,
    return
  }
  func.func @transform_0(%arg0: i32, %arg1: i32) -> (i32, i32, i32) {
    %c0_i32 = arith.constant 0 : i32
    %c0_i32_0 = arith.constant 0 : i32
    return %arg0, %arg1, %c0_i32 : i32, i32, i32
  }
  func.func @transform_1(%arg0: i32, %arg1: i32) -> (i32, i32, i32) {
    %c0_i32 = arith.constant 0 : i32
    %c0_i32_0 = arith.constant 0 : i32
    %c0_i32_1 = arith.constant 0 : i32
    return %arg0, %c0_i32, %c0_i32_0 : i32, i32, i32
  }
  func.func @transform_2(%arg0: i32, %arg1: i32) -> (i32, i32, i32) {
    %c0_i32 = arith.constant 0 : i32
    %c0_i32_0 = arith.constant 0 : i32
    %c0_i32_1 = arith.constant 0 : i32
    return %arg0, %c0_i32, %c0_i32_0 : i32, i32, i32
  }
  func.func @transform_3(%arg0: i32, %arg1: i32) -> (i32, i32) {
    %c0_i32 = arith.constant 0 : i32
    %c0_i32_0 = arith.constant 0 : i32
    %c0_i32_1 = arith.constant 0 : i32
    return %c0_i32, %c0_i32_0 : i32, i32
  }
  func.func @transform_4(%arg0: i32, %arg1: i32) -> (i32, i32) {
    %c0_i32 = arith.constant 0 : i32
    %c0_i32_0 = arith.constant 0 : i32
    %c0_i32_1 = arith.constant 0 : i32
    return %c0_i32, %c0_i32_0 : i32, i32
  }
  func.func @transform_5(%arg0: i32, %arg1: i32) -> (i32, i32) {
    %c0_i32 = arith.constant 0 : i32
    %c0_i32_0 = arith.constant 0 : i32
    %c0_i32_1 = arith.constant 0 : i32
    return %c0_i32, %c0_i32_0 : i32, i32
  }
  func.func @transform_6(%arg0: i32, %arg1: i32) -> (i32, i32) {
    %c0_i32 = arith.constant 0 : i32
    %c0_i32_0 = arith.constant 0 : i32
    %c0_i32_1 = arith.constant 0 : i32
    return %c0_i32, %c0_i32_0 : i32, i32
  }
  func.func @transform_7(%arg0: i32, %arg1: i32) -> (i32, i32) {
    %c0_i32 = arith.constant 0 : i32
    %c0_i32_0 = arith.constant 0 : i32
    %c0_i32_1 = arith.constant 0 : i32
    return %c0_i32, %c0_i32_0 : i32, i32
  }
  func.func @transform_8(%arg0: i32, %arg1: i32) -> (i32, i32) {
    %c0_i32 = arith.constant 0 : i32
    %c0_i32_0 = arith.constant 0 : i32
    %c0_i32_1 = arith.constant 0 : i32
    return %c0_i32, %c0_i32_0 : i32, i32
  }
  func.func @transform_9(%arg0: i32, %arg1: i32) -> (i32, i32) {
    %c0_i32 = arith.constant 0 : i32
    %c0_i32_0 = arith.constant 0 : i32
    %c0_i32_1 = arith.constant 0 : i32
    return %c0_i32, %c0_i32_0 : i32, i32
  }
  func.func @transform_10(%arg0: i32, %arg1: i32) -> (i32, i32) {
    %c0_i32 = arith.constant 0 : i32
    %c0_i32_0 = arith.constant 0 : i32
    %c0_i32_1 = arith.constant 0 : i32
    return %c0_i32, %c0_i32_0 : i32, i32
  }
  func.func @transform_11(%arg0: i32, %arg1: i32) -> (i32, i32, i32) {
    %c0_i32 = arith.constant 0 : i32
    %c0_i32_0 = arith.constant 0 : i32
    return %arg0, %arg1, %c0_i32 : i32, i32, i32
  }
}

</mosaic_0001>

<bundles_post_ra>
// kernel: tpu_custom_call.1
= control target key start
LH: loop header
LB: loop body
LE: loop exit
PB: predicated region body
PF: predicated region fallthrough
CT: control target
= control target key end

     0   :  { %s8892_s0 = inlined_call_operand.hbm [shape: f32[2,8,32], index: 0, kind: input, shape index: {}]   ;;  %s8893_s1 = inlined_call_operand.hbm [shape: f32[2,8,32], index: 1, kind: input, shape index: {}]   ;;  %s8894_s2 = inlined_call_operand.hbm [shape: f32[2,8,32], index: 2, kind: input, shape index: {}]   ;;  %s8895_s3 = inlined_call_operand.hbm [shape: f32[32,32], index: 3, kind: input, shape index: {}]   ;;  %s8896_s4 = inlined_call_operand.vmem [shape: f32[1,32], index: 4, kind: input, shape index: {}]   ;;  %s8897_s5 = inlined_call_operand.hbm [shape: f32[32,32], index: 5, kind: input, shape index: {}]   ;;  %s8898_s6 = inlined_call_operand.vmem [shape: f32[1,32], index: 6, kind: input, shape index: {}]   ;;  %s8899_s7 = inlined_call_operand.hbm [shape: f32[32,32], index: 7, kind: input, shape index: {}]   ;;  %s8900_s8 = inlined_call_operand.hbm [shape: f32[1,32], index: 8, kind: input, shape index: {}]   ;;  %s8901_s9 = inlined_call_operand.vmem [shape: f32[32,32], index: 9, kind: input, shape index: {}]   ;;  %s8902_s10 = inlined_call_operand.vmem [shape: f32[1,32], index: 10, kind: input, shape index: {}]   ;;  %s8903_s11 = inlined_call_operand.hbm [shape: f32[2,8,32], index: 11, kind: output, shape index: {}]  }
   0x1   :  { %8929 = sst [smem:[#allocation31_spill]] %s8893_s1 }
   0x2   :  { %8930 = sst [smem:[#allocation32_spill]] %s8895_s3 }
   0x3   :  { %8931 = sst [smem:[#allocation33_spill]] %s8899_s7 }
   0x4   :  { %8932 = sst [smem:[#allocation34_spill]] %s8901_s9 }
   0x5   :  { %8933 = sst [smem:[#allocation35_spill]] %s8902_s10 }
   0x6   :  { %8934 = sst [smem:[#allocation36_spill]] %s8903_s11 }
   0x7   :  { %16 = vsyncpa [#allocation6], 0 }
   0x8   :  { %18 = vsyncpa [#allocation6 + $0x1], 0 }
   0x9   :  { %19 = vsyncpa [#allocation9], 0 }
   0xa   :  { %21 = vsyncpa [#allocation9 + $0x1], 0 }
   0xb   :  { %22 = vsyncpa [#allocation12], 0 }
   0xc   :  { %23 = vsyncpa [#allocation15], 0 }
   0xd   :  { %24 = vsyncpa [#allocation7], 0 }
   0xe   :  { %26 = vsyncpa [#allocation7 + $0x1], 0  ;;  %s7984_s17 = smov 0   ;;  %s7986_s18 = smov 0  }
   0xf   :  { %s7988_s19 = smov 0   ;;  %s7990_s20 = smov 0  }
  0x10   :  { %s7992_s21 = smov 0   ;;  %s7994_s22 = smov 0  }
  0x11 LB: > { %8935 = sst [smem:[#allocation23_spill]] %s7883_s17  ;;  %s8015_s23 = sadd.s32 4294967295, %s7903_s22   ;;  %s7903_s22 = sphi %s7994_s22, %s32_s22   ;;  %s7899_s21 = sphi %s7992_s21, %s8982_s21   ;;  %s7895_s20 = sphi %s7990_s20, %s8981_s20   ;;  %s7891_s19 = sphi %s7988_s19, %s8985_s19   ;;  %s7887_s18 = sphi %s7986_s18, %s8984_s18   ;;  %s7883_s17 = sphi %s7984_s17, %s8983_s17  }
  0x12   : > { %8936 = sst [smem:[#allocation24_spill]] %s7895_s20  ;;  %p6451_p0 = scmp.ge.s32.totalorder %s7903_s22, 1 }
  0x13   : > { %8937 = sst [smem:[#allocation25_spill]] %s7899_s21  ;;  %p8913_p1 = scmp.eq.s32.totalorder %s8015_s23, 0 }
  0x14   : > { %8938 = sst [smem:[#allocation26_spill]] %s7903_s22  ;;  %p325_p2 = scmp.lt.s32.totalorder %s7903_s22, 3 }
  0x15   : > { %s7905_s25 = smov [#allocation11]   ;;  %s7906_s28 = smov [#allocation14]  }
  0x16   : > { %p8020_p3 = pnand %p6451_p0, %p325_p2  ;;  %s337_s26 = sshll.u32 %s7905_s25, 4  ;;  %s8024_s26 = int_to_ptr.vmem [resolvable:$true] %s337_s26 }
  0x17   : > { %s369_s29 = sshll.u32 %s7906_s28, 4  ;;  %s8941_s3 = sld [smem:[#allocation32_spill]]  ;;  %s8035_s29 = int_to_ptr.vmem [resolvable:$true] %s369_s29 }
  0x18   : > { %s8939_s24 = scalar_select %p8020_p3, 1, 0 }
  0x19   : > { %p7491_p4 = pneg %p8020_p3 }
  0x1b   : > { %p8031_p6 = pnand %p7491_p4, %p8913_p1 }
  0x1d   : > { %s8940_s27 = scalar_select %p8031_p6, 1, 0 }
  0x1e   : > { %s7607_s13 = scalar_lea.hbm %s8941_s3, 512  ;;  %p8045_p8 = pneg %p8031_p6 }
  0x1f   : > { %p7608_p7 = scmp.ne.s32.totalorder %s8941_s3, %s7607_s13  ;;  %p7614_p11 = scmp.lt.u32.totalorder %s7607_s13, %s8941_s3 }
  0x20   : > { %s8942_s16 = scalar_select %p8045_p8, 1, 0 }
  0x21   : > { %p7610_p9 = pnand %p8045_p8, %p7608_p7 }
  0x23   : > { %p7611_p10 = pneg %p7610_p9 }
  0x25   : > { %p7616_p12 = pnand %p7614_p11, %p7611_p10 }
  0x27   : > { %7619 = shalt.err (!%p7616_p12)
}
  0x28   : > { %s7620_s30 = scalar_lea.vmem %s8024_s26, 512  ;;  %p7628_p4 = scmp.lt.s32.totalorder %s8024_s26, %s8024_s26 }
  0x29   : > { %p7621_p13 = scmp.ne.s32.totalorder %s8024_s26, %s7620_s30  ;;  %p7629_p5 = scmp.lt.s32.totalorder %s7620_s30, %s7620_s30 }
  0x2b   : > { %p7623_p0 = pnand %p7621_p13, %p8045_p8  ;;  %p7630_p7 = por %p7629_p5, %p7628_p4 }
  0x2d   : > { %p7624_p2 = pneg %p7623_p0 }
  0x2f   : > { %p7631_p9 = pnand %p7630_p7, %p7624_p2 }
  0x31   : > { %7634 = shalt.err (!%p7631_p9)
}
  0x32   : > { %s8906_s12 = smov 128   ;;  %s8907_s13 = smov 8  }
  0x33   : > { %7494 = dma.hbm_to_vmem [thread:$0]  (!%p8031_p6), %s8941_s3, 512, %s8024_s26, [#allocation12], %s8906_s12, %s8906_s12, %s8907_s13  }
  0x34   : > { %s8943_s7 = sld [smem:[#allocation33_spill]] }
  0x3a   : > { %s7635_s30 = scalar_lea.hbm %s8943_s7, 512 }
  0x3b   : > { %p7636_p5 = scmp.ne.s32.totalorder %s8943_s7, %s7635_s30  ;;  %p7642_p12 = scmp.lt.u32.totalorder %s7635_s30, %s8943_s7 }
  0x3d   : > { %p7638_p10 = pnand %p7636_p5, %p8045_p8 }
  0x3f   : > { %p7639_p11 = pneg %p7638_p10 }
  0x41   : > { %p7644_p13 = pnand %p7642_p12, %p7639_p11 }
  0x43   : > { %7647 = shalt.err (!%p7644_p13)
}
  0x44   : > { %s7648_s26 = scalar_lea.vmem %s8035_s29, 512  ;;  %p7656_p7 = scmp.lt.s32.totalorder %s8035_s29, %s8035_s29 }
  0x45   : > { %p7649_p0 = scmp.ne.s32.totalorder %s8035_s29, %s7648_s26  ;;  %p7657_p9 = scmp.lt.s32.totalorder %s7648_s26, %s7648_s26 }
  0x47   : > { %p7651_p2 = pnand %p7649_p0, %p8045_p8  ;;  %p7658_p5 = por %p7657_p9, %p7656_p7 }
  0x49   : > { %p7652_p4 = pneg %p7651_p2 }
  0x4b   : > { %p7659_p10 = pnand %p7658_p5, %p7652_p4 }
  0x4d   : > { %7662 = shalt.err (!%p7659_p10)
}
  0x4e   : > { %7500 = dma.hbm_to_vmem [thread:$0]  (!%p8031_p6), %s8943_s7, 512, %s8035_s29, [#allocation15], %s8906_s12, %s8906_s12, %s8907_s13  }
  0x4f   : > { %s6450_s11 = sadd.s32 4294967294, %s7903_s22   ;;  %s44_s20 = sadd.s32 1, %s7899_s21 }
  0x50   : > { %p46_p11 = scmp.ge.s32.totalorder %s44_s20, 2  ;;  %s53_s14 = sadd.s32 1, %s7891_s19 }
  0x51   : > { %p60_p12 = scmp.ne.s32.totalorder %s7891_s19, %s7887_s18  ;;  %p61_p13 = scmp.eq.s32.totalorder %s7903_s22, 0 }
  0x52   : > { %s8987_s20 = smov (%p46_p11, %s44_s20), 0  ;;  %p66_p2 = scmp.ne.s32.totalorder %s7887_s18, %s7883_s17 }
  0x53   : > { %8944 = sst [smem:[#allocation27_spill]] %s8987_s20  ;;  %p8103_p0 = por %p61_p13, %p60_p12 }
  0x54   : > { %s48_s29 = ssub.s32 %s7899_s21, %s8987_s20  ;;  %p312_p4 = scmp.eq.s32.totalorder %s8015_s23, 1 }
  0x55   : > { %p51_p7 = scmp.eq.s32.totalorder %s48_s29, 0  ;;  %p8114_p9 = por %p8913_p1, %p66_p2 }
  0x56   : > { %p8118_p5 = por %p312_p4, %p60_p12  ;;  %p318_p10 = scmp.eq.s32.totalorder %s6450_s11, 1 }
  0x57   : > { %s8946_s25 = scalar_select %p8114_p9, 1, 0 }
  0x58   : > { %s8947_s28 = scalar_select %p8118_p5, 1, 0 }
  0x59   : > { %s8123_s30 = scalar_select %p51_p7, %s7891_s19, %s53_s14  }
  0x5a   : > { %8948 = sst [smem:[#allocation28_spill]] %s8947_s28  ;;  %p8125_p11 = por %p318_p10, %p66_p2 }
  0x5b   : > { %8949 = sst [smem:[#allocation29_spill]] %s8123_s30  ;;  %p7522_p13 = scmp.lt.s32.totalorder %s7903_s22, 2 }
  0x5c   : > { %s8950_s26 = scalar_select %p8125_p11, 1, 0 }
  0x5d   : > { %s8908_s9 = sand.u32 1, %s7891_s19   ;;  %s8132_s10 = sshll.u32 %s7899_s21, 7 }
  0x5e   : > { %8951 = sst [smem:[#allocation30_spill]] %s8950_s26  ;;  %s8136_s29 = sshll.u32 %s8908_s9, 3 }
  0x5f   : > { %p8140_p12 = pnand %p7522_p13, %p8103_p0  ;;  %s419_s11 = sand.u32 1, %s7903_s22  }
  0x60   : > { %s8953_s1 = sld [smem:[#allocation31_spill]]  ;;  %s423_s7 = scalar_lea.vmem [#allocation8], %s8136_s29 }
  0x61   : > { %s8952_s12 = scalar_select %p8140_p12, 1, 0 }
  0x62   : > { %s430_s9 = sshll.u32 %s423_s7, 4  ;;  %s8154_s15 = scalar_lea.sflag [#allocation9], %s419_s11  ;;  %s8152_s9 = int_to_ptr.vmem [resolvable:$true] %s430_s9 }
  0x63   : > { %p8160_p2 = pneg %p8140_p12 }
  0x65   : > { %s8954_s21 = scalar_select %p8160_p2, 1, 0 }
  0x66   : > { %s8149_s3 = scalar_lea.hbm %s8953_s1, %s8132_s10  ;;  %s7668_s30 = scalar_lea.hbm %s8953_s1, 256 }
  0x67   : > { %s7663_s20 = scalar_lea.hbm %s8149_s3, 128  ;;  %p7669_p10 = scmp.lt.u32.totalorder %s8149_s3, %s8953_s1 }
  0x68   : > { %p7664_p0 = scmp.ne.s32.totalorder %s8149_s3, %s7663_s20  ;;  %p7670_p13 = scmp.lt.u32.totalorder %s7668_s30, %s7663_s20 }
  0x69   : > { %p7672_p11 = scmp.lt.u32.totalorder %s7663_s20, %s8149_s3 }
  0x6a   : > { %p7666_p4 = pnand %p8160_p2, %p7664_p0  ;;  %p7671_p1 = por %p7670_p13, %p7669_p10 }
  0x6c   : > { %p7667_p7 = pneg %p7666_p4  ;;  %p7673_p5 = por %p7672_p11, %p7671_p1 }
  0x6e   : > { %p7674_p9 = pnand %p7673_p5, %p7667_p7 }
  0x70   : > { %7677 = shalt.err (!%p7674_p9)
}
  0x71   : > { %s7678_s11 = scalar_lea.vmem %s8152_s9, 128  ;;  %s7909_s13 = smov [#allocation8]  }
  0x72   : > { %p7679_p0 = scmp.ne.s32.totalorder %s8152_s9, %s7678_s11  ;;  %s7683_s14 = sshll.u32 %s7909_s13, 4  ;;  %s7684_s14 = int_to_ptr.vmem [resolvable:$false] %s7683_s14 }
  0x73   : > { %s7685_s22 = scalar_lea.vmem %s7684_s14, 256  ;;  %p7686_p6 = scmp.lt.s32.totalorder %s8152_s9, %s7684_s14 }
  0x74   : > { %p7681_p4 = pnand %p7679_p0, %p8160_p2  ;;  %p7687_p8 = scmp.lt.s32.totalorder %s7685_s22, %s7678_s11 }
  0x76   : > { %p7682_p3 = pneg %p7681_p4  ;;  %p7688_p10 = por %p7687_p8, %p7686_p6 }
  0x78   : > { %p7689_p13 = pnand %p7688_p10, %p7682_p3 }
  0x7a   : > { %7692 = shalt.err (!%p7689_p13)
}
  0x7b   : > { %7510 = dma.hbm_to_vmem [thread:$0]  (!%p8140_p12), %s8149_s3, 128, %s8152_s9, %s8154_s15  }
  0x7c   : > { %s7910_s20 = smov [#allocation13]   ;;  %s7911_s7 = smov [#allocation16]  }
  0x7d   : > { %s353_s30 = sshll.u32 %s7910_s20, 4  ;;  %s383_s1 = sshll.u32 %s7911_s7, 4  ;;  %s354_s30 = int_to_ptr.vmem [resolvable:$true] %s353_s30  ;;  %s384_s1 = int_to_ptr.vmem [resolvable:$true] %s383_s1 }
  0x7e   : > { %s7693_s14 = scalar_lea.hbm %s8897_s5, 512  ;;  %p8955_p3 = scmp.ne.s32.totalorder %s8942_s16, 0 }
  0x7f   : > { %p7694_p1 = scmp.ne.s32.totalorder %s8897_s5, %s7693_s14  ;;  %p7700_p9 = scmp.lt.u32.totalorder %s7693_s14, %s8897_s5 }
  0x81   : > { %p7696_p6 = pnand %p7694_p1, %p8955_p3 }
  0x83   : > { %p7697_p8 = pneg %p7696_p6 }
  0x85   : > { %p7702_p5 = pnand %p7700_p9, %p7697_p8 }
  0x87   : > { %7705 = shalt.err (!%p7702_p5)
}
  0x88   : > { %s7706_s3 = scalar_lea.vmem %s354_s30, 512  ;;  %p7714_p4 = scmp.lt.s32.totalorder %s354_s30, %s354_s30 }
  0x89   : > { %p7707_p11 = scmp.ne.s32.totalorder %s354_s30, %s7706_s3  ;;  %p7715_p10 = scmp.lt.s32.totalorder %s7706_s3, %s7706_s3 }
  0x8b   : > { %p7709_p7 = pnand %p7707_p11, %p8955_p3  ;;  %p7716_p13 = por %p7715_p10, %p7714_p4 }
  0x8d   : > { %p7710_p0 = pneg %p7709_p7 }
  0x8f   : > { %p7717_p12 = pnand %p7716_p13, %p7710_p0 }
  0x91   : > { %7720 = shalt.err (!%p7717_p12)
}
  0x92   : > { %p8956_p1 = scmp.ne.s32.totalorder %s8940_s27, 0  ;;  %s8957_s26 = smov 8  }
  0x93   : > { %s8958_s9 = smov 128   ;;  %s7721_s13 = scalar_lea.hbm %s8900_s8, 16 }
  0x94   : > { %7497 = dma.hbm_to_vmem [thread:$0]  (!%p8956_p1), %s8897_s5, 512, %s354_s30, [#allocation12], %s8958_s9, %s8958_s9, %s8957_s26  }
  0x95   : > { %p7722_p6 = scmp.ne.s32.totalorder %s8900_s8, %s7721_s13  ;;  %p7728_p9 = scmp.lt.u32.totalorder %s7721_s13, %s8900_s8 }
  0x97   : > { %p7724_p12 = pnand %p7722_p6, %p8955_p3 }
  0x99   : > { %p7725_p8 = pneg %p7724_p12 }
  0x9b   : > { %p7730_p5 = pnand %p7728_p9, %p7725_p8 }
  0x9d   : > { %7733 = shalt.err (!%p7730_p5)
}
  0x9e   : > { %s7734_s17 = scalar_lea.vmem %s384_s1, 16  ;;  %s7741_s30 = scalar_lea.vmem %s384_s1, 32 }
  0x9f   : > { %p7735_p11 = scmp.ne.s32.totalorder %s384_s1, %s7734_s17  ;;  %p7742_p4 = scmp.lt.s32.totalorder %s384_s1, %s384_s1 }
  0xa0   : > { %p7743_p10 = scmp.lt.s32.totalorder %s7741_s30, %s7734_s17 }
  0xa1   : > { %p7737_p7 = pnand %p7735_p11, %p8955_p3 }
  0xa2   : > { %p7744_p13 = por %p7743_p10, %p7742_p4 }
  0xa3   : > { %p7738_p0 = pneg %p7737_p7 }
  0xa5   : > { %p7745_p2 = pnand %p7744_p13, %p7738_p0 }
  0xa7   : > { %7748 = shalt.err (!%p7745_p2)
}
  0xa8   : > { %7503 = dma.hbm_to_vmem [thread:$0]  (!%p8956_p1), %s8900_s8, 16, %s384_s1, [#allocation15]  }
  0xa9   : > { %s8227_s20 = scalar_lea.hbm %s8892_s0, %s8132_s10  ;;  %s404_s7 = scalar_lea.vmem [#allocation5], %s8136_s29 }
  0xaa   : > { %s412_s27 = sshll.u32 %s404_s7, 4  ;;  %s8236_s11 = scalar_lea.hbm %s8894_s2, %s8132_s10  ;;  %s8230_s27 = int_to_ptr.vmem [resolvable:$true] %s412_s27 }
  0xab   : > { %s8959_s22 = sand.u32 1, %s7891_s19   ;;  %s7749_s3 = scalar_lea.hbm %s8227_s20, 128 }
  0xac   : > { %s401_s1 = scalar_lea.sflag [#allocation6], %s8959_s22  ;;  %p7750_p2 = scmp.ne.s32.totalorder %s8227_s20, %s7749_s3 }
  0xad   : > { %p8960_p3 = scmp.ne.s32.totalorder %s8954_s21, 0  ;;  %s7754_s26 = scalar_lea.hbm %s8892_s0, 256 }
  0xae   : > { %p7755_p12 = scmp.lt.u32.totalorder %s8227_s20, %s8892_s0  ;;  %p7756_p8 = scmp.lt.u32.totalorder %s7754_s26, %s7749_s3 }
  0xaf   : > { %p7752_p1 = pnand %p7750_p2, %p8960_p3  ;;  %p7758_p5 = scmp.lt.u32.totalorder %s7749_s3, %s8227_s20 }
  0xb0   : > { %p7757_p9 = por %p7756_p8, %p7755_p12 }
  0xb1   : > { %p7753_p6 = pneg %p7752_p1 }
  0xb2   : > { %p7759_p11 = por %p7758_p5, %p7757_p9 }
  0xb4   : > { %p7760_p7 = pnand %p7759_p11, %p7753_p6 }
  0xb6   : > { %7763 = shalt.err (!%p7760_p7)
}
  0xb7   : > { %s7764_s10 = scalar_lea.vmem %s8230_s27, 128  ;;  %s7912_s28 = smov [#allocation5]  }
  0xb8   : > { %p7765_p0 = scmp.ne.s32.totalorder %s8230_s27, %s7764_s10  ;;  %s7769_s7 = sshll.u32 %s7912_s28, 4  ;;  %s7770_s7 = int_to_ptr.vmem [resolvable:$false] %s7769_s7 }
  0xb9   : > { %s7771_s13 = scalar_lea.vmem %s7770_s7, 256  ;;  %p7772_p13 = scmp.lt.s32.totalorder %s8230_s27, %s7770_s7 }
  0xba   : > { %p7767_p4 = pnand %p7765_p0, %p8960_p3  ;;  %p7773_p2 = scmp.lt.s32.totalorder %s7771_s13, %s7764_s10 }
  0xbc   : > { %p7768_p10 = pneg %p7767_p4  ;;  %p7774_p1 = por %p7773_p2, %p7772_p13 }
  0xbe   : > { %p7775_p12 = pnand %p7774_p1, %p7768_p10 }
  0xc0   : > { %7778 = shalt.err (!%p7775_p12)
}
  0xc1   : > { %p8961_p6 = scmp.ne.s32.totalorder %s8952_s12, 0  ;;  %s441_s14 = scalar_lea.vmem [#allocation10], %s8136_s29 }
  0xc2   : > { %s448_s22 = sshll.u32 %s441_s14, 4  ;;  %s7779_s3 = scalar_lea.hbm %s8236_s11, 128  ;;  %s449_s22 = int_to_ptr.vmem [resolvable:$true] %s448_s22 }
  0xc3   : > { %7507 = dma.hbm_to_vmem [thread:$0]  (!%p8961_p6), %s8227_s20, 128, %s8230_s27, %s401_s1  }
  0xc4   : > { %p7780_p8 = scmp.ne.s32.totalorder %s8236_s11, %s7779_s3  ;;  %s7784_s26 = scalar_lea.hbm %s8894_s2, 256 }
  0xc5   : > { %p7785_p11 = scmp.lt.u32.totalorder %s8236_s11, %s8894_s2  ;;  %p7786_p7 = scmp.lt.u32.totalorder %s7784_s26, %s7779_s3 }
  0xc6   : > { %p7782_p9 = pnand %p7780_p8, %p8960_p3  ;;  %p7788_p4 = scmp.lt.u32.totalorder %s7779_s3, %s8236_s11 }
  0xc7   : > { %p7787_p0 = por %p7786_p7, %p7785_p11 }
  0xc8   : > { %p7783_p5 = pneg %p7782_p9 }
  0xc9   : > { %p7789_p10 = por %p7788_p4, %p7787_p0 }
  0xcb   : > { %p7790_p13 = pnand %p7789_p10, %p7783_p5 }
  0xcd   : > { %7793 = shalt.err (!%p7790_p13)
}
  0xce   : > { %s7794_s29 = scalar_lea.vmem %s449_s22, 128  ;;  %s7913_s20 = smov [#allocation10]  }
  0xcf   : > { %p7795_p2 = scmp.ne.s32.totalorder %s449_s22, %s7794_s29  ;;  %s7799_s27 = sshll.u32 %s7913_s20, 4  ;;  %s7800_s27 = int_to_ptr.vmem [resolvable:$false] %s7799_s27 }
  0xd0   : > { %s7801_s1 = scalar_lea.vmem %s7800_s27, 256  ;;  %p7802_p8 = scmp.lt.s32.totalorder %s449_s22, %s7800_s27 }
  0xd1   : > { %p7797_p1 = pnand %p7795_p2, %p8960_p3  ;;  %p7803_p9 = scmp.lt.s32.totalorder %s7801_s1, %s7794_s29 }
  0xd3   : > { %p7798_p12 = pneg %p7797_p1  ;;  %p7804_p6 = por %p7803_p9, %p7802_p8 }
  0xd5   : > { %p7805_p7 = pnand %p7804_p6, %p7798_p12 }
  0xd7   : > { %7808 = shalt.err (!%p7805_p7)
}
  0xd8   : > { %p8962_p11 = scmp.ne.s32.totalorder %s8952_s12, 0  ;;  %p8963_p5 = scmp.ne.s32.totalorder %s8939_s24, 0 }
  0xd9   : > { %s8283_s21 = sand.u32 (!%p8963_p5), 1, %s7887_s18   ;;  %p8964_p3 = scmp.ne.s32.totalorder (!%p8963_p5), %s8946_s25, 0 }
  0xda   : > { %7513 = dma.hbm_to_vmem [thread:$0]  (!%p8962_p11), %s8236_s11, 128, %s449_s22, %s8154_s15  }
  0xdb   : > { %457 = sbr.rel (%p8963_p5) target bundleno = 1976 (0x7b8), region = 64  ;;  %s8286_s10 = sshll.u32 (!%p8963_p5), %s8283_s21, 3 }
  0xdc   : > { %s460_s28 = scalar_lea.sflag (!%p8963_p5), [#allocation6], %s8283_s21  ;;  %s463_s7 = scalar_lea.vmem (!%p8963_p5), [#allocation5], %s8286_s10 }
  0xe2   : > { %7862 = dma.done.wait (%p8964_p3), %s460_s28, 128  }
  0xe3   : > { %7864 = vsyncadd (%p8964_p3), %s460_s28, 4294967168  ;;  %s468_s24 = sand.u32 1, %s8015_s23   ;;  %s472_s15 = scalar_lea.vmem [#allocation8], %s8286_s10 }
  0xe4   : > { %s469_s12 = scalar_lea.sflag [#allocation9], %s468_s24 }
  0xe5   : > { %7866 = dma.done.wait (%p8964_p3), %s469_s12, 256  }
  0xe6   : > { %7868 = vsyncadd (%p8964_p3), %s469_s12, 4294967040  ;;  %s481_s11 = scalar_lea.vmem [#allocation10], %s8286_s10  ;;  %p8965_p6 = scmp.eq.s32.totalorder %s8015_s23, 0 }
  0xe8   : > { %7870 = dma.done.wait (%p8965_p6), [#allocation12], 1024   ;;  %p8966_p0 = pmov %p8965_p6 }
  0xea   : > { %7872 = vsyncadd (%p8966_p0), [#allocation12], 4294966272  ;;  %p8967_p4 = pmov %p8966_p0 }
  0xeb   : > { %p8968_p10 = pmov %p8966_p0 }
  0xec   : > { %7874 = dma.done.wait (%p8967_p4), [#allocation15], 528  }
  0xed   : > { %7876 = vsyncadd (%p8968_p10), [#allocation15], 4294966768  ;;  %v7914_v0 = vmov 0.0|0.0   ;;  %vm7915_vm0 = vmmov 0   ;;  %v7916_v1 = vmov 0.0   ;;  %vm562_vm1 = vcmask 261120  }
  0xee   : > { %7200 = vmatprep.subr.bf16.mxu1 %v7914_v0  ;;  %7218 = vmatprep.subr.bf16.mxu0 %v7914_v0  ;;  %v551_v2 = vld [vmem:[#allocation13] sm:$0xff]  ;;  %v552_v3 = vld [vmem:[#allocation13 + $0x8] sm:$0xff]  ;;  %v553_v4 = vld [vmem:[#allocation13 + $0x10] sm:$0xff]  ;;  %vm1551_vm2 = vcmask 64512   ;;  %s7917_s13 = smov 112   ;;  %s7918_s14 = smov 120  }
  0xef   : > { %6704 = vmatprep.mubr.msk.f32.mxu1 %vm7915_vm0, %v7916_v1  ;;  %6737 = vmatprep.mubr.msk.f32.mxu0 %vm7915_vm0, %v7916_v1  ;;  %v567_v5 = vand.u32 4294901760, %v551_v2  ;;  %v570_v6 = vand.u32 4294901760, %v552_v3  ;;  %v554_v7 = vld [vmem:[#allocation13 + $0x18] sm:$0xff]  ;;  %v573_v8 = vand.u32 4294901760, %v553_v4  ;;  %v550_v9 = vld [vmem:[%s472_s15] sm:$0xff]  ;;  %v8365_v46 = vld [vmem:[#allocation11 + $0x10] sm:$0xff] }
  0xf0   : > { %v576_v10 = vand.u32 4294901760, %v554_v7  ;;  %v564_v11 = vsel %vm562_vm1, %v550_v9, 0  ;;  %v8351_v33 = vld [vmem:[#allocation11] sm:$0xff]  ;;  %v8353_v34 = vld [vmem:[#allocation11 + $0x8] sm:$0xff]  ;;  %v1586_v35 = vld [vmem:[%s463_s7] sm:$0xff]  ;;  %v1609_v57 = vand.u32 4294901760, %v8365_v46 }
  0xf1   : > { %v8316_v12 = vpack.c.bf16 %v570_v6, %v567_v5  ;;  %v8318_v13 = vsub.f32 %v551_v2, %v567_v5  ;;  %v8320_v14 = vsub.f32 %v552_v3, %v570_v6  ;;  %v8322_v15 = vsub.f32 %v553_v4, %v573_v8  ;;  %v8357_v39 = vld [vmem:[#allocation14] sm:$0xff]  ;;  %v1053_v45 = vld [vmem:[#allocation14 + $0x8] sm:$0xff]  ;;  %v1590_v47 = vld [vmem:[#allocation11 + $0x18] sm:$0xff]  ;;  %s7919_s17 = smov 104   ;;  %s7920_s30 = smov 8  }
  0xf2   : > { %v8324_v16 = vsub.f32 %v554_v7, %v576_v10  ;;  %v8326_v17 = vand.u32 4294901760, %v564_v11  ;;  %v8330_v18 = vpack.c.bf16 %v576_v10, %v573_v8  ;;  %v1603_v42 = vand.u32 4294901760, %v8351_v33  ;;  %v8373_v52 = vld [vmem:[#allocation14 + $0x10] sm:$0xff]  ;;  %v8375_v53 = vld [vmem:[#allocation14 + $0x18] sm:$0xff]  ;;  %s7921_s26 = smov 16   ;;  %s8969_s29 = sld [smem:[#allocation34_spill]] }
  0xf3   : > { %7202 = vmatpush3.bf16.msra.mxu1 %v8316_v12  ;;  %7220 = vmatpush3.bf16.msra.mxu0 %v8316_v12  ;;  %v648_v19 = vand.u32 4294901760, %v8318_v13  ;;  %v655_v20 = vand.u32 4294901760, %v8320_v14  ;;  %v662_v21 = vand.u32 4294901760, %v8322_v15  ;;  %v1606_v43 = vand.u32 4294901760, %v8353_v34  ;;  %v1051_v54 = vld [vmem:[%s481_s11] sm:$0xff]  ;;  %s7922_s12 = smov 24  }
  0xf4   : > { %7203 = vmatprep.subr.bf16.mxu1 %v7914_v0  ;;  %7221 = vmatprep.subr.bf16.mxu0 %v7914_v0  ;;  %v8338_v22 = vsub.f32 %v564_v11, %v8326_v17  ;;  %v669_v23 = vand.u32 4294901760, %v8324_v16  ;;  %v1600_v44 = vsel %vm562_vm1, %v1586_v35, 0  ;;  %v1067_v48 = vand.u32 4294901760, %v8357_v39  ;;  %s8970_s15 = sld [smem:[#allocation24_spill]]  ;;  %s8971_s11 = sld [smem:[#allocation28_spill]] }
  0xf5   : > { %v649_v24 = vsub.f32 %v8318_v13, %v648_v19  ;;  %v656_v25 = vsub.f32 %v8320_v14, %v655_v20  ;;  %v663_v26 = vsub.f32 %v8322_v15, %v662_v21  ;;  %v7225_v31 = vpack.c.bf16 %v655_v20, %v648_v19  ;;  %s545_s22 = scalar_lea.vmem [#allocation17], %s8286_s10  ;;  %s6274_s16 = scalar_lea.sflag [#allocation7], %s8283_s21 }
  0xf6   : > { %v637_v27 = vand.u32 4294901760, %v8338_v22  ;;  %v670_v28 = vsub.f32 %v8324_v16, %v669_v23  ;;  %v7228_v41 = vpack.c.bf16 %v669_v23, %v662_v21  ;;  %v8371_v50 = vand.u32 4294901760, %v1600_v44  ;;  %s6288_s3 = sshll.u32 %s545_s22, 4  ;;  %s7923_s10 = smov [#allocation17]   ;;  %s8844_s3 = int_to_ptr.vmem [resolvable:$true] %s6288_s3 }
  0xf7   : > { %7205 = vmatpush3.bf16.msra.mxu1 %v8330_v18  ;;  %7223 = vmatpush3.bf16.msra.mxu0 %v8330_v18  ;;  %v650_v29 = vand.u32 4294901760, %v649_v24  ;;  %v657_v30 = vand.u32 4294901760, %v656_v25  ;;  %v664_v37 = vand.u32 4294901760, %v663_v26  ;;  %v1070_v51 = vand.u32 4294901760, %v1053_v45  ;;  %s7809_s20 = scalar_lea.vmem %s8844_s3, 128  ;;  %s7813_s27 = sshll.u32 %s7923_s10, 4  ;;  %s7814_s27 = int_to_ptr.vmem [resolvable:$false] %s7813_s27 }
  0xf8   : > { %v638_v32 = vsub.f32 %v8338_v22, %v637_v27  ;;  %7206 = vmatprep.subr.bf16.mxu1 %v7914_v0  ;;  %7224 = vmatprep.subr.bf16.mxu0 %v7914_v0  ;;  %v671_v38 = vand.u32 4294901760, %v670_v28  ;;  %v8380_v55 = vsub.f32 %v8351_v33, %v1603_v42  ;;  %v8383_v56 = vsub.f32 %v8353_v34, %v1606_v43  ;;  %p7810_p13 = scmp.ne.s32.totalorder %s8844_s3, %s7809_s20  ;;  %s7815_s1 = scalar_lea.vmem %s7814_s27, 256 }
  0xf9   : > { %v7207_v36 = vpack.c.bf16 %v657_v30, %v650_v29  ;;  %v1612_v58 = vand.u32 4294901760, %v1590_v47  ;;  %v7213_v59 = vpack.c.bf16 %v8320_v14, %v8318_v13  ;;  %v8390_v60 = vsub.f32 %v8357_v39, %v1067_v48  ;;  %p7816_p8 = scmp.lt.s32.totalorder %s8844_s3, %s7814_s27  ;;  %p7817_p9 = scmp.lt.s32.totalorder %s7815_s1, %s7809_s20 }
  0xfa   : > { %v639_v40 = vand.u32 4294901760, %v638_v32  ;;  %6738 = vmatmul.mubr.f32.vlgmr.msra.gmra.mrb[0].mxu0 %v637_v27  ;;  %v7210_v49 = vpack.c.bf16 %v671_v38, %v664_v37  ;;  %v8392_v61 = vsub.f32 %v1053_v45, %v1070_v51  ;;  %v1073_v62 = vand.u32 4294901760, %v8373_v52  ;;  %p8974_p2 = scmp.ne.s32.totalorder %s8971_s11, 0 }
  0xfb   : > { %7226 = vmatpush3.bf16.msra.mxu0 %v7225_v31  ;;  %6748 = vmatprep.mubr.msk.f32.mxu0 %vm7915_vm0, %v7916_v1  ;;  %v1076_v63 = vand.u32 4294901760, %v8375_v53  ;;  %v1064_v2 = vsel %vm562_vm1, %v1051_v54, 0  ;;  %v8400_v3 = vsub.f32 %v1600_v44, %v8371_v50  ;;  %v8408_v5 = vsub.f32 %v8365_v46, %v1609_v57  ;;  %p7818_p7 = por %p7817_p9, %p7816_p8 }
  0xfc   : > { %6705 = vmatmul.mubr.f32.vlgmr.msra.gmra.mrb[0].mxu1 %v639_v40  ;;  %7227 = vmatprep.subr.bf16.mxu0 %v7914_v0  ;;  %v8402_v4 = vand.u32 4294901760, %v1064_v2  ;;  %v8410_v6 = vsub.f32 %v1590_v47, %v1612_v58  ;;  %v1684_v7 = vand.u32 4294901760, %v8380_v55  ;;  %v1691_v8 = vand.u32 4294901760, %v8383_v56  ;;  %p7811_p1 = pnand %p7810_p13, %p8974_p2 }
  0xfd   : > { %7208 = vmatpush3.bf16.msra.mxu1 %v7207_v36  ;;  %6715 = vmatprep.mubr.msk.f32.mxu1 %vm7915_vm0, %v7916_v1  ;;  %v7216_v9 = vpack.c.bf16 %v8324_v16, %v8322_v15  ;;  %v8424_v11 = vsub.f32 %v8373_v52, %v1073_v62  ;;  %v1148_v13 = vand.u32 4294901760, %v8390_v60  ;;  %v1155_v14 = vand.u32 4294901760, %v8392_v61 }
  0xfe   : > { %7209 = vmatprep.subr.bf16.mxu1 %v7914_v0  ;;  %v8419_v10 = vsub.f32 %v1064_v2, %v8402_v4  ;;  %v8432_v15 = vpack.c.bf16 %v1606_v43, %v1603_v42  ;;  %v1673_v16 = vand.u32 4294901760, %v8400_v3  ;;  %v1685_v19 = vsub.f32 %v8380_v55, %v1684_v7  ;;  %p7812_p12 = pneg %p7811_p1 }
  0xff   : > { %7229 = vmatpush3.bf16.msra.mxu0 %v7228_v41  ;;  %v1692_v20 = vsub.f32 %v8383_v56, %v1691_v8  ;;  %v1698_v21 = vand.u32 4294901760, %v8408_v5  ;;  %v1705_v23 = vand.u32 4294901760, %v8410_v6  ;;  %v8445_v24 = vpack.c.bf16 %v1070_v51, %v1067_v48 }
 0x100   : > { %7230 = vmatprep.subr.bf16.mxu0 %v7914_v0  ;;  %v1137_v25 = vand.u32 4294901760, %v8419_v10  ;;  %v1156_v26 = vsub.f32 %v8392_v61, %v1155_v14  ;;  %v1162_v27 = vand.u32 4294901760, %v8424_v11  ;;  %v8457_v29 = vpack.c.bf16 %v1612_v58, %v1609_v57  ;;  %v6472_v58 = vld [vmem:[%s8898_s6] ss:$0 sm:$0xff]  ;;  %p7819_p11 = pnand %p7818_p7, %p7812_p12 }
 0x101   : > { %7211 = vmatpush3.bf16.msra.mxu1 %v7210_v49  ;;  %v1674_v30 = vsub.f32 %v8400_v3, %v1673_v16  ;;  %v1686_v31 = vand.u32 4294901760, %v1685_v19  ;;  %v1693_v32 = vand.u32 4294901760, %v1692_v20  ;;  %v1699_v33 = vsub.f32 %v8408_v5, %v1698_v21 }
 0x102   : > { %7212 = vmatprep.subr.bf16.mxu1 %v7914_v0  ;;  %6749 = vmatmul.mubr.f32.vlgmr.msra.gmra.mrb[0].mxu0 %v8326_v17  ;;  %v8474_v34 = vpack.c.bf16 %v1076_v63, %v1073_v62  ;;  %v1138_v35 = vsub.f32 %v8419_v10, %v1137_v25  ;;  %v1157_v37 = vand.u32 4294901760, %v1156_v26  ;;  %v1163_v38 = vsub.f32 %v8424_v11, %v1162_v27 }
 0x103   : > { %7232 = vmatpush3.bf16.msra.mxu0 %v8316_v12  ;;  %6759 = vmatprep.mubr.msk.f32.mxu0 %vm7915_vm0, %v7916_v1  ;;  %v8427_v12 = vsub.f32 %v8375_v53, %v1076_v63  ;;  %v1675_v39 = vand.u32 4294901760, %v1674_v30  ;;  %v7279_v40 = vpack.c.bf16 %v1693_v32, %v1686_v31  ;;  %v1700_v41 = vand.u32 4294901760, %v1699_v33 }
 0x104   : > { %6716 = vmatmul.mubr.f32.vlgmr.msra.gmra.mrb[0].mxu1 %v8326_v17  ;;  %7233 = vmatprep.subr.bf16.mxu0 %v7914_v0  ;;  %v1139_v43 = vand.u32 4294901760, %v1138_v35  ;;  %v1164_v45 = vand.u32 4294901760, %v1163_v38  ;;  %v7285_v49 = vpack.c.bf16 %v8383_v56, %v8380_v55  ;;  %v7249_v51 = vpack.c.bf16 %v8392_v61, %v8390_v60 }
 0x105   : > { %7214 = vmatpush3.bf16.msra.mxu1 %v7213_v59  ;;  %6726 = vmatprep.mubr.msk.f32.mxu1 %vm7915_vm0, %v7916_v1  ;;  %v1169_v28 = vand.u32 4294901760, %v8427_v12  ;;  %v7288_v52 = vpack.c.bf16 %v8410_v6, %v8408_v5  ;;  %v7252_v53 = vpack.c.bf16 %v8427_v12, %v8424_v11  ;;  %v7297_v54 = vpack.c.bf16 %v1691_v8, %v1684_v7  ;;  %v6474_v5 = vld [vmem:[%s8896_s4] ss:$0 sm:$0xff] }
 0x106   : > { %7215 = vmatprep.subr.bf16.mxu1 %v7914_v0  ;;  %v7261_v57 = vpack.c.bf16 %v1155_v14, %v1148_v13  ;;  %v7300_v55 = vpack.c.bf16 %v1705_v23, %v1698_v21  ;;  %v6473_v21 = vld [vmem:[#allocation16] ss:$0 sm:$0xff]  ;;  %vm3924_vm3 = vcmask 130112   ;;  %vm4847_vm4 = vcmask 195712  }
 0x107   : > { %7235 = vmatpush3.bf16.msra.mxu0 %v8330_v18  ;;  %v1149_v18 = vsub.f32 %v8390_v60, %v1148_v13  ;;  %v7264_v56 = vpack.c.bf16 %v1169_v28, %v1162_v27  ;;  %vm5770_vm5 = vcmask 261312  }
 0x108   : > { %7272 = vmatprep.subr.bf16.mxu0 %v7914_v0 }
 0x109   : > { %7217 = vmatpush3.bf16.msra.mxu1 %v7216_v9  ;;  %v1150_v36 = vand.u32 4294901760, %v1149_v18 }
 0x10a   : > { %6760 = vmatmul.mubr.f32.vlgmr.msra.gmra.mrb[0].mxu0 %v8326_v17  ;;  %7236 = vmatprep.subr.bf16.mxu1 %v7914_v0  ;;  %v1706_v17 = vsub.f32 %v8410_v6, %v1705_v23 }
 0x10b   : > { %7274 = vmatpush3.bf16.msra.mxu0 %v8432_v15  ;;  %6836 = vmatprep.mubr.msk.f32.mxu0 %vm7915_vm0, %v7916_v1  ;;  %v7243_v44 = vpack.c.bf16 %v1157_v37, %v1150_v36 }
 0x10c   : > { %6727 = vmatmul.mubr.f32.vlgmr.msra.gmra.mrb[0].mxu1 %v8338_v22  ;;  %7275 = vmatprep.subr.bf16.mxu0 %v7914_v0  ;;  %v1170_v22 = vsub.f32 %v8427_v12, %v1169_v28  ;;  %v1707_v42 = vand.u32 4294901760, %v1706_v17 }
 0x10d   : > { %7238 = vmatpush3.bf16.msra.mxu1 %v8445_v24  ;;  %6770 = vmatprep.mubr.msk.f32.mxu1 %vm7915_vm0, %v7916_v1 }
 0x10e   : > { %7239 = vmatprep.subr.bf16.mxu1 %v7914_v0  ;;  %v1171_v46 = vand.u32 4294901760, %v1170_v22  ;;  %v7282_v47 = vpack.c.bf16 %v1707_v42, %v1700_v41 }
 0x10f   : > { %7277 = vmatpush3.bf16.msra.mxu0 %v8457_v29 }
 0x110   : > { %7278 = vmatprep.subr.bf16.mxu0 %v7914_v0  ;;  %v7246_v48 = vpack.c.bf16 %v1171_v46, %v1164_v45 }
 0x111   : > { %7241 = vmatpush3.bf16.msra.mxu1 %v8474_v34 }
 0x112   : > { %6837 = vmatmul.mubr.f32.vlgmr.msra.gmra.mrb[2].mxu0 %v1675_v39  ;;  %7242 = vmatprep.subr.bf16.mxu1 %v7914_v0 }
 0x113   : > { %7280 = vmatpush3.bf16.msra.mxu0 %v7279_v40  ;;  %6847 = vmatprep.mubr.msk.f32.mxu0 %vm7915_vm0, %v7916_v1 }
 0x114   : > { %7281 = vmatprep.subr.bf16.mxu0 %v7914_v0  ;;  %6771 = vmatmul.mubr.f32.vlgmr.msra.gmra.mrb[2].mxu1 %v1139_v43 }
 0x115   : > { %7244 = vmatpush3.bf16.msra.mxu1 %v7243_v44  ;;  %6781 = vmatprep.mubr.msk.f32.mxu1 %vm7915_vm0, %v7916_v1 }
 0x116   : > { %7245 = vmatprep.subr.bf16.mxu1 %v7914_v0 }
 0x117   : > { %7283 = vmatpush3.bf16.msra.mxu0 %v7282_v47 }
 0x118   : > { %7284 = vmatprep.subr.bf16.mxu0 %v7914_v0 }
 0x119   : > { %7247 = vmatpush3.bf16.msra.mxu1 %v7246_v48 }
 0x11a   : > { %6848 = vmatmul.mubr.f32.vlgmr.msra.gmra.mrb[2].mxu0 %v8371_v50  ;;  %7248 = vmatprep.subr.bf16.mxu1 %v7914_v0 }
 0x11b   : > { %7286 = vmatpush3.bf16.msra.mxu0 %v7285_v49  ;;  %6858 = vmatprep.mubr.msk.f32.mxu0 %vm7915_vm0, %v7916_v1 }
 0x11c   : > { %7287 = vmatprep.subr.bf16.mxu0 %v7914_v0  ;;  %6782 = vmatmul.mubr.f32.vlgmr.msra.gmra.mrb[2].mxu1 %v8402_v4 }
 0x11d   : > { %7250 = vmatpush3.bf16.msra.mxu1 %v7249_v51  ;;  %6792 = vmatprep.mubr.msk.f32.mxu1 %vm7915_vm0, %v7916_v1 }
 0x11e   : > { %7251 = vmatprep.subr.bf16.mxu1 %v7914_v0 }
 0x11f   : > { %7289 = vmatpush3.bf16.msra.mxu0 %v7288_v52 }
 0x120   : > { %7290 = vmatprep.subr.bf16.mxu0 %v7914_v0 }
 0x121   : > { %7253 = vmatpush3.bf16.msra.mxu1 %v7252_v53 }
 0x122   : > { %6859 = vmatmul.mubr.f32.vlgmr.msra.gmra.mrb[2].mxu0 %v8400_v3  ;;  %7254 = vmatprep.subr.bf16.mxu1 %v7914_v0 }
 0x123   : > { %7292 = vmatpush3.bf16.msra.mxu0 %v8432_v15  ;;  %6869 = vmatprep.mubr.msk.f32.mxu0 %vm7915_vm0, %v7916_v1 }
 0x124   : > { %7293 = vmatprep.subr.bf16.mxu0 %v7914_v0  ;;  %6793 = vmatmul.mubr.f32.vlgmr.msra.gmra.mrb[2].mxu1 %v8419_v10 }
 0x125   : > { %7256 = vmatpush3.bf16.msra.mxu1 %v8445_v24  ;;  %6803 = vmatprep.mubr.msk.f32.mxu1 %vm7915_vm0, %v7916_v1 }
 0x126   : > { %7257 = vmatprep.subr.bf16.mxu1 %v7914_v0 }
 0x127   : > { %7295 = vmatpush3.bf16.msra.mxu0 %v8457_v29 }
 0x128   : > { %7296 = vmatprep.subr.bf16.mxu0 %v7914_v0 }
 0x129   : > { %7259 = vmatpush3.bf16.msra.mxu1 %v8474_v34 }
 0x12a   : > { %6870 = vmatmul.mubr.f32.vlgmr.msra.gmra.mrb[2].mxu0 %v1673_v16  ;;  %7260 = vmatprep.subr.bf16.mxu1 %v7914_v0 }
 0x12b   : > { %7298 = vmatpush3.bf16.msra.mxu0 %v7297_v54  ;;  %6880 = vmatprep.mubr.msk.f32.mxu0 %vm7915_vm0, %v7916_v1 }
 0x12c   : > { %7299 = vmatprep.subr.bf16.mxu0 %v7914_v0  ;;  %6804 = vmatmul.mubr.f32.vlgmr.msra.gmra.mrb[2].mxu1 %v1137_v25 }
 0x12d   : > { %7262 = vmatpush3.bf16.msra.mxu1 %v7261_v57  ;;  %6814 = vmatprep.mubr.msk.f32.mxu1 %vm7915_vm0, %v7916_v1 }
 0x12e   : > { %7263 = vmatprep.subr.bf16.mxu1 %v7914_v0 }
 0x12f   : > { %7301 = vmatpush3.bf16.msra.mxu0 %v7300_v55 }
 0x130   : > { %7302 = vmatprep.subr.bf16.mxu0 %v7914_v0 }
 0x131   : > { %7265 = vmatpush3.bf16.msra.mxu1 %v7264_v56 }
 0x132   : > { %6881 = vmatmul.mubr.f32.vlgmr.msra.gmra.mrb[2].mxu0 %v8371_v50  ;;  %7266 = vmatprep.subr.bf16.mxu1 %v7914_v0 }
 0x133   : > { %7304 = vmatpush3.bf16.msra.mxu0 %v8432_v15  ;;  %6891 = vmatprep.mubr.msk.f32.mxu0 %vm7915_vm0, %v7916_v1 }
 0x134   : > { %7305 = vmatprep.subr.bf16.mxu0 %v7914_v0  ;;  %6815 = vmatmul.mubr.f32.vlgmr.msra.gmra.mrb[2].mxu1 %v8402_v4 }
 0x135   : > { %7268 = vmatpush3.bf16.msra.mxu1 %v8445_v24  ;;  %6825 = vmatprep.mubr.msk.f32.mxu1 %vm7915_vm0, %v7916_v1 }
 0x136   : > { %7269 = vmatprep.subr.bf16.mxu1 %v7914_v0 }
 0x137   : > { %7307 = vmatpush3.bf16.msra.mxu0 %v8457_v29 }
 0x138   : > { %6954 = vmatprep.subr.mxu0 %v7916_v1 }
 0x139   : > { %7271 = vmatpush3.bf16.msra.mxu1 %v8474_v34 }
 0x13a   : > { %6892 = vmatmul.mubr.f32.vlgmr.msra.gmra.mrb[2].mxu0 %v8371_v50  ;;  %6894 = vmatprep.subr.mxu1 %v7916_v1 }
 0x13b   : > { %6956 = vmatprep.mubr.msk.f32.mxu0 %vm7915_vm0, %v7916_v1 }
 0x13c   : > { %6826 = vmatmul.mubr.f32.vlgmr.msra.gmra.mrb[2].mxu1 %v8402_v4 }
 0x13d   : > { %6896 = vmatprep.mubr.msk.f32.mxu1 %vm7915_vm0, %v7916_v1 }
 0x1dd   : > { %v1047_v59 = vpop.f32.mrb[0].mxu0 }
 0x1de   : > { %v6761_v60 = vpop.f32.mrb[1].mxu0 }
 0x1df   : > { %v812_v61 = vpop.f32.mrb[0].mxu1 }
 0x1e0   : > { %v7344_v62 = vadd.f32 %v6472_v58, %v812_v61  ;;  %v6728_v63 = vpop.f32.mrb[1].mxu1 }
 0x1e2   : > { %v7345_v50 = vadd.f32 %v7344_v62, %v1047_v59 }
 0x1e4   : > { %1552 = vst.msk [vmem:[#allocation2] sm:$0xff] %vm1551_vm2, %v7345_v50  ;;  %1566 = vrot.lane.b32.xlu1 %v7345_v50, %s7917_s13  ;;  %1555 = vrot.lane.b32.xlu0 %v7345_v50, %s7918_s14 }
 0x1eb   : > { %v2087_v2 = vld [vmem:[#allocation2] sm:$0xff] }
 0x1ec   : > { %v2094_v3 = vsel %vm1551_vm2, %v2087_v2, 0 }
 0x1ed   : > { %v2097_v4 = vand.u32 4294901760, %v2094_v3 }
 0x1ef   : > { %6895 = vmatpush3.xpose.msra.mxu1 %v2097_v4  ;;  %v2174_v7 = vsub.f32 %v2094_v3, %v2097_v4 }
 0x1f0   : > { %6899 = vmatprep.subr.mxu1 %v7916_v1 }
 0x1f1   : > { %v2175_v12 = vand.u32 4294901760, %v2174_v7 }
 0x1f3   : > { %v2176_v15 = vsub.f32 %v2174_v7, %v2175_v12 }
 0x1f5   : > { %v2177_v20 = vand.u32 4294901760, %v2176_v15 }
 0x20d   : > { %v2083_v6 = vpop.f32.mrb[2].mxu0 }
 0x20e   : > { %v7347_v8 = vadd.f32 %v6474_v5, %v2083_v6  ;;  %v6893_v9 = vpop.f32.mrb[3].mxu0 }
 0x20f   : > { %v1547_v23 = vpop.f32.mrb[2].mxu1 }
 0x210   : > { %v2091_v10 = vsel %vm1551_vm2, %v7347_v8, 0  ;;  %3930 = vrot.lane.b32.xlu1 %v7347_v8, %s7917_s13  ;;  %3007 = vrot.lane.b32.xlu0 %v7347_v8, %s7918_s14  ;;  %v8609_v24 = vadd.f32 %v6473_v21, %v1547_v23  ;;  %v6827_v25 = vpop.f32.mrb[3].mxu1 }
 0x211   : > { %v2162_v11 = vand.u32 4294901760, %v2091_v10 }
 0x212   : > { %1553 = vst.msk [vmem:[#allocation3] sm:$0xff] %vm1551_vm2, %v8609_v24 }
 0x213   : > { %v2163_v13 = vsub.f32 %v2091_v10, %v2162_v11 }
 0x214   : > { %4853 = vrot.lane.b32.xlu1 %v7347_v8, %s7919_s17  ;;  %1576 = vrot.lane.b32.xlu0 %v7345_v50, %s7919_s17 }
 0x215   : > { %v2164_v14 = vand.u32 4294901760, %v2163_v13 }
 0x217   : > { %v2165_v16 = vsub.f32 %v2163_v13, %v2164_v14 }
 0x219   : > { %v2166_v19 = vand.u32 4294901760, %v2165_v16  ;;  %v8618_v18 = vld [vmem:[#allocation3] sm:$0xff] }
 0x21a   : > { %v8621_v26 = vand.u32 4294901760, %v8618_v18 }
 0x21b   : > { %6897 = vmatmul.mubr.f32.vlgmr.msra.gmra.mrb[4].mxu1 %v2166_v19 }
 0x21c   : > { %6900 = vmatpush3.xpose.msra.mxu1 %v2177_v20  ;;  %6901 = vmatprep.mubr.msk.f32.mxu1 %vm7915_vm0, %v7916_v1 }
 0x21d   : > { %6904 = vmatprep.subr.mxu1 %v7916_v1 }
 0x223   : > { %6902 = vmatmul.mubr.f32.vlgmr.msra.gmra.mrb[4].mxu1 %v2162_v11 }
 0x224   : > { %6905 = vmatpush3.xpose.msra.mxu1 %v2174_v7  ;;  %6906 = vmatprep.mubr.msk.f32.mxu1 %vm7915_vm0, %v7916_v1 }
 0x225   : > { %6909 = vmatprep.subr.mxu1 %v7916_v1 }
 0x22b   : > { %6907 = vmatmul.mubr.f32.vlgmr.msra.gmra.mrb[4].mxu1 %v2163_v13 }
 0x22c   : > { %6910 = vmatpush3.xpose.msra.mxu1 %v2097_v4  ;;  %6911 = vmatprep.mubr.msk.f32.mxu1 %vm7915_vm0, %v7916_v1 }
 0x22d   : > { %6914 = vmatprep.subr.mxu1 %v7916_v1 }
 0x233   : > { %6912 = vmatmul.mubr.f32.vlgmr.msra.gmra.mrb[4].mxu1 %v2164_v14 }
 0x234   : > { %6915 = vmatpush3.xpose.msra.mxu1 %v2175_v12  ;;  %6916 = vmatprep.mubr.msk.f32.mxu1 %vm7915_vm0, %v7916_v1 }
 0x235   : > { %6919 = vmatprep.subr.mxu1 %v7916_v1 }
 0x23b   : > { %6917 = vmatmul.mubr.f32.vlgmr.msra.gmra.mrb[4].mxu1 %v2162_v11 }
 0x23c   : > { %6920 = vmatpush3.xpose.msra.mxu1 %v2097_v4  ;;  %6921 = vmatprep.mubr.msk.f32.mxu1 %vm7915_vm0, %v7916_v1 }
 0x23d   : > { %6924 = vmatprep.subr.mxu1 %v7916_v1 }
 0x243   : > { %6922 = vmatmul.mubr.f32.vlgmr.msra.gmra.mrb[4].mxu1 %v2162_v11 }
 0x244   : > { %6926 = vmatprep.mubr.msk.f32.mxu1 %vm7915_vm0, %v7916_v1  ;;  %6925 = vmatpush3.msra.mxu1 %v8621_v26 }
 0x245   : > { %6929 = vmatprep.subr.mxu1 %v7916_v1 }
 0x256   : > { %v1567_v27 = vpop.permute.xlu1 %1566  ;;  %v1556_v28 = vpop.permute.xlu0 %1555 }
 0x257   : > { %1570 = vst.msk [vmem:[#allocation2 + $0x10] sm:$0xff] %vm1551_vm2, %v1567_v27  ;;  %1559 = vst.msk [vmem:[#allocation2 + $0x8] sm:$0xff] %vm1551_vm2, %v1556_v28 }
 0x25e   : > { %v3004_v29 = vld [vmem:[#allocation2 + $0x8] sm:$0xff]  ;;  %v3927_v43 = vld [vmem:[#allocation2 + $0x10] sm:$0xff] }
 0x25f   : > { %v3012_v30 = vsel %vm1551_vm2, %v3004_v29, 0  ;;  %v3935_v45 = vsel %vm1551_vm2, %v3927_v43, 0 }
 0x260   : > { %v3015_v31 = vand.u32 4294901760, %v3012_v30  ;;  %v3938_v47 = vand.u32 4294901760, %v3935_v45 }
 0x262   : > { %6955 = vmatpush3.xpose.msra.mxu0 %v3015_v31  ;;  %v3092_v32 = vsub.f32 %v3012_v30, %v3015_v31  ;;  %v4015_v49 = vsub.f32 %v3935_v45, %v3938_v47 }
 0x263   : > { %6959 = vmatprep.subr.mxu0 %v7916_v1 }
 0x264   : > { %v3093_v35 = vand.u32 4294901760, %v3092_v32  ;;  %v4016_v52 = vand.u32 4294901760, %v4015_v49 }
 0x266   : > { %v3094_v22 = vsub.f32 %v3092_v32, %v3093_v35  ;;  %v4017_v54 = vsub.f32 %v4015_v49, %v4016_v52 }
 0x268   : > { %v3095_v41 = vand.u32 4294901760, %v3094_v22  ;;  %v4018_v55 = vand.u32 4294901760, %v4017_v54  ;;  %v2634_v22 = vsub.f32 %v8618_v18, %v8621_v26 }
 0x282   : > { %v3008_v33 = vpop.permute.xlu0 %3007  ;;  %v3931_v42 = vpop.permute.xlu1 %3930 }
 0x283   : > { %v3009_v17 = vsel %vm1551_vm2, %v3008_v33, 0  ;;  %v3932_v44 = vsel %vm1551_vm2, %v3931_v42, 0  ;;  %v2635_v42 = vand.u32 4294901760, %v2634_v22 }
 0x284   : > { %v3080_v34 = vand.u32 4294901760, %v3009_v17  ;;  %v4003_v46 = vand.u32 4294901760, %v3932_v44 }
 0x286   : > { %v3081_v36 = vsub.f32 %v3009_v17, %v3080_v34  ;;  %v1577_v37 = vpop.permute.xlu0 %1576  ;;  %v4004_v48 = vsub.f32 %v3932_v44, %v4003_v46  ;;  %v4854_v56 = vpop.permute.xlu1 %4853 }
 0x287   : > { %1580 = vst.msk [vmem:[#allocation2 + $0x18] sm:$0xff] %vm1551_vm2, %v1577_v37  ;;  %v4855_v59 = vsel %vm1551_vm2, %v4854_v56, 0 }
 0x288   : > { %v3082_v38 = vand.u32 4294901760, %v3081_v36  ;;  %v4005_v51 = vand.u32 4294901760, %v4004_v48  ;;  %v4926_v61 = vand.u32 4294901760, %v4855_v59 }
 0x28a   : > { %v3083_v39 = vsub.f32 %v3081_v36, %v3082_v38  ;;  %v4006_v53 = vsub.f32 %v4004_v48, %v4005_v51  ;;  %v4927_v63 = vsub.f32 %v4855_v59, %v4926_v61 }
 0x28c   : > { %v3084_v40 = vand.u32 4294901760, %v3083_v39  ;;  %v4007_v57 = vand.u32 4294901760, %v4006_v53  ;;  %v4928_v2 = vand.u32 4294901760, %v4927_v63 }
 0x28e   : > { %6957 = vmatmul.mubr.f32.vlgmr.msra.gmra.mrb[4].mxu0 %v3084_v40  ;;  %v4850_v58 = vld [vmem:[#allocation2 + $0x18] sm:$0xff]  ;;  %v4929_v4 = vsub.f32 %v4927_v63, %v4928_v2 }
 0x28f   : > { %6960 = vmatpush3.xpose.msra.mxu0 %v3095_v41  ;;  %6961 = vmatprep.mubr.msk.f32.mxu0 %vm7915_vm0, %v7916_v1  ;;  %v4858_v60 = vsel %vm1551_vm2, %v4850_v58, 0 }
 0x290   : > { %6964 = vmatprep.subr.mxu0 %v7916_v1  ;;  %v4861_v62 = vand.u32 4294901760, %v4858_v60  ;;  %v4930_v6 = vand.u32 4294901760, %v4929_v4 }
 0x292   : > { %v4938_v50 = vsub.f32 %v4858_v60, %v4861_v62 }
 0x294   : > { %v4939_v3 = vand.u32 4294901760, %v4938_v50 }
 0x296   : > { %6962 = vmatmul.mubr.f32.vlgmr.msra.gmra.mrb[4].mxu0 %v3080_v34  ;;  %v4940_v5 = vsub.f32 %v4938_v50, %v4939_v3 }
 0x297   : > { %6965 = vmatpush3.xpose.msra.mxu0 %v3092_v32  ;;  %6966 = vmatprep.mubr.msk.f32.mxu0 %vm7915_vm0, %v7916_v1 }
 0x298   : > { %6969 = vmatprep.subr.mxu0 %v7916_v1  ;;  %v4941_v7 = vand.u32 4294901760, %v4940_v5 }
 0x29e   : > { %6967 = vmatmul.mubr.f32.vlgmr.msra.gmra.mrb[4].mxu0 %v3081_v36 }
 0x29f   : > { %6970 = vmatpush3.xpose.msra.mxu0 %v3015_v31  ;;  %6971 = vmatprep.mubr.msk.f32.mxu0 %vm7915_vm0, %v7916_v1 }
 0x2a0   : > { %6974 = vmatprep.subr.mxu0 %v7916_v1 }
 0x2a6   : > { %6972 = vmatmul.mubr.f32.vlgmr.msra.gmra.mrb[4].mxu0 %v3082_v38 }
 0x2a7   : > { %6975 = vmatpush3.xpose.msra.mxu0 %v3093_v35  ;;  %6976 = vmatprep.mubr.msk.f32.mxu0 %vm7915_vm0, %v7916_v1 }
 0x2a8   : > { %6979 = vmatprep.subr.mxu0 %v7916_v1 }
 0x2ae   : > { %6977 = vmatmul.mubr.f32.vlgmr.msra.gmra.mrb[4].mxu0 %v3080_v34 }
 0x2af   : > { %6980 = vmatpush3.xpose.msra.mxu0 %v3015_v31  ;;  %6981 = vmatprep.mubr.msk.f32.mxu0 %vm7915_vm0, %v7916_v1 }
 0x2b0   : > { %7014 = vmatprep.subr.mxu0 %v7916_v1 }
 0x2b6   : > { %6982 = vmatmul.mubr.f32.vlgmr.msra.gmra.mrb[4].mxu0 %v3080_v34 }
 0x2b7   : > { %7015 = vmatpush3.xpose.msra.mxu0 %v3938_v47  ;;  %7016 = vmatprep.mubr.msk.f32.mxu0 %vm7915_vm0, %v7916_v1 }
 0x2b8   : > { %7019 = vmatprep.subr.mxu0 %v7916_v1 }
 0x2ba   : > { %7017 = vmatmul.mubr.f32.vlgmr.msra.gmra.mrb[6].mxu0 %v4007_v57 }
 0x2bb   : > { %7020 = vmatpush3.xpose.msra.mxu0 %v4018_v55  ;;  %7021 = vmatprep.mubr.msk.f32.mxu0 %vm7915_vm0, %v7916_v1 }
 0x2bc   : > { %7024 = vmatprep.subr.mxu0 %v7916_v1 }
 0x2c2   : > { %7022 = vmatmul.mubr.f32.vlgmr.msra.gmra.mrb[6].mxu0 %v4003_v46 }
 0x2c3   : > { %7025 = vmatpush3.xpose.msra.mxu0 %v4015_v49  ;;  %7026 = vmatprep.mubr.msk.f32.mxu0 %vm7915_vm0, %v7916_v1 }
 0x2c4   : > { %7029 = vmatprep.subr.mxu0 %v7916_v1 }
 0x2ca   : > { %7027 = vmatmul.mubr.f32.vlgmr.msra.gmra.mrb[6].mxu0 %v4004_v48 }
 0x2cb   : > { %7030 = vmatpush3.xpose.msra.mxu0 %v3938_v47  ;;  %7031 = vmatprep.mubr.msk.f32.mxu0 %vm7915_vm0, %v7916_v1 }
 0x2cc   : > { %7034 = vmatprep.subr.mxu0 %v7916_v1 }
 0x2d2   : > { %7032 = vmatmul.mubr.f32.vlgmr.msra.gmra.mrb[6].mxu0 %v4005_v51 }
 0x2d3   : > { %7035 = vmatpush3.xpose.msra.mxu0 %v4016_v52  ;;  %7036 = vmatprep.mubr.msk.f32.mxu0 %vm7915_vm0, %v7916_v1 }
 0x2d4   : > { %7039 = vmatprep.subr.mxu0 %v7916_v1 }
 0x2da   : > { %7037 = vmatmul.mubr.f32.vlgmr.msra.gmra.mrb[6].mxu0 %v4003_v46 }
 0x2db   : > { %7040 = vmatpush3.xpose.msra.mxu0 %v3938_v47  ;;  %7041 = vmatprep.mubr.msk.f32.mxu0 %vm7915_vm0, %v7916_v1  ;;  %v2636_v47 = vsub.f32 %v2634_v22, %v2635_v42 }
 0x2dc   : > { %7074 = vmatprep.subr.mxu0 %v7916_v1 }
 0x2dd   : > { %v2637_v51 = vand.u32 4294901760, %v2636_v47 }
 0x2e2   : > { %7042 = vmatmul.mubr.f32.vlgmr.msra.gmra.mrb[6].mxu0 %v4003_v46 }
 0x2e3   : > { %7075 = vmatpush3.xpose.msra.mxu0 %v4861_v62  ;;  %7076 = vmatprep.mubr.msk.f32.mxu0 %vm7915_vm0, %v7916_v1 }
 0x2e4   : > { %7079 = vmatprep.subr.mxu0 %v7916_v1 }
 0x2e6   : > { %7077 = vmatmul.mubr.f32.vlgmr.msra.gmra.mrb[8].mxu0 %v4930_v6 }
 0x2e7   : > { %7080 = vmatpush3.xpose.msra.mxu0 %v4941_v7  ;;  %7081 = vmatprep.mubr.msk.f32.mxu0 %vm7915_vm0, %v7916_v1 }
 0x2e8   : > { %7084 = vmatprep.subr.mxu0 %v7916_v1 }
 0x2ee   : > { %7082 = vmatmul.mubr.f32.vlgmr.msra.gmra.mrb[8].mxu0 %v4926_v61 }
 0x2ef   : > { %7085 = vmatpush3.xpose.msra.mxu0 %v4938_v50  ;;  %7086 = vmatprep.mubr.msk.f32.mxu0 %vm7915_vm0, %v7916_v1 }
 0x2f0   : > { %7089 = vmatprep.subr.mxu0 %v7916_v1 }
 0x2f6   : > { %7087 = vmatmul.mubr.f32.vlgmr.msra.gmra.mrb[8].mxu0 %v4927_v63 }
 0x2f7   : > { %7090 = vmatpush3.xpose.msra.mxu0 %v4861_v62  ;;  %7091 = vmatprep.mubr.msk.f32.mxu0 %vm7915_vm0, %v7916_v1 }
 0x2f8   : > { %7094 = vmatprep.subr.mxu0 %v7916_v1 }
 0x2fe   : > { %7092 = vmatmul.mubr.f32.vlgmr.msra.gmra.mrb[8].mxu0 %v4928_v2 }
 0x2ff   : > { %7095 = vmatpush3.xpose.msra.mxu0 %v4939_v3  ;;  %7096 = vmatprep.mubr.msk.f32.mxu0 %vm7915_vm0, %v7916_v1 }
 0x300   : > { %7099 = vmatprep.subr.mxu0 %v7916_v1 }
 0x306   : > { %7097 = vmatmul.mubr.f32.vlgmr.msra.gmra.mrb[8].mxu0 %v4926_v61 }
 0x307   : > { %7100 = vmatpush3.xpose.msra.mxu0 %v4861_v62  ;;  %7101 = vmatprep.mubr.msk.f32.mxu0 %vm7915_vm0, %v7916_v1 }
 0x308   : > { %7308 = vmatprep.subr.bf16.mxu0 %v7914_v0 }
 0x30e   : > { %7102 = vmatmul.mubr.f32.vlgmr.msra.gmra.mrb[8].mxu0 %v4926_v61 }
 0x30f   : > { %7142 = vmatprep.mubr.msk.f32.mxu0 %vm7915_vm0, %v7916_v1 }
 0x316   : > { %v2538_v8 = vpop.f32.mrb[4].mxu1 }
 0x317   : > { %v6923_v9 = vpop.f32.mrb[5].mxu1  ;;  %v2542_v10 = vsel %vm1551_vm2, %v2538_v8, -inf }
 0x318   : > { %2543 = vmax.xlane.f32.xlu0 %v2542_v10 }
 0x389   : > { %v3456_v11 = vpop.f32.mrb[4].mxu0 }
 0x38a   : > { %v6983_v12 = vpop.f32.mrb[5].mxu0  ;;  %v3460_v13 = vsel %vm1551_vm2, %v3456_v11, -inf }
 0x38b   : > { %3461 = vmax.xlane.f32.xlu1 %v3460_v13 }
 0x3a5   : > { %v2544_v14 = vpop.xlane.xlu0 %2543 }
 0x3a6   : > { %v2545_v15 = vsub.f32 %v2538_v8, %v2544_v14 }
 0x3a8   : > { %v2546_v16 = vmul.f32 1.442695, %v2545_v15 }
 0x3aa   : > { %7591 = vpow2.f32 %v2546_v16 }
 0x3b4   : > { %v7592_v19 = vpop.eup %7591 }
 0x3b5   : > { %v4379_v20 = vpop.f32.mrb[6].mxu0  ;;  %v2548_v21 = vsel %vm1551_vm2, %v7592_v19, 0.0 }
 0x3b6   : > { %v7043_v23 = vpop.f32.mrb[7].mxu0  ;;  %2549 = vadd.xlane.f32.xlu0 %v2548_v21  ;;  %v4383_v25 = vsel %vm1551_vm2, %v4379_v20, -inf }
 0x3ba   : > { %4384 = vmax.xlane.f32.xlu0 %v4383_v25 }
 0x3e1   : > { %v5302_v27 = vpop.f32.mrb[8].mxu0 }
 0x3e2   : > { %v7103_v28 = vpop.f32.mrb[9].mxu0  ;;  %v5306_v29 = vsel %vm1551_vm2, %v5302_v27, -inf }
 0x3e3   : > { %5307 = vmax.xlane.f32.xlu0 %v5306_v29 }
 0x418   : > { %v3462_v30 = vpop.xlane.xlu1 %3461 }
 0x419   : > { %v3463_v31 = vsub.f32 %v3456_v11, %v3462_v30 }
 0x41b   : > { %v3464_v32 = vmul.f32 1.442695, %v3463_v31 }
 0x41d   : > { %7593 = vpow2.f32 %v3464_v32 }
 0x427   : > { %v7594_v33 = vpop.eup %7593 }
 0x428   : > { %v3466_v17 = vsel %vm1551_vm2, %v7594_v33, 0.0 }
 0x429   : > { %3467 = vadd.xlane.f32.xlu1 %v3466_v17 }
 0x43a   : > { %1561 = vrot.lane.b32.xlu1 %v8609_v24, %s7918_s14  ;;  %s6477_s14 = sshll.u32 %s8970_s15, 7 }
 0x443   : > { %v2550_v34 = vpop.xlane.xlu0 %2549 }
 0x444   : > { %7595 = vrcp.f32 %v2550_v34 }
 0x447   : > { %v4385_v35 = vpop.xlane.xlu0 %4384 }
 0x448   : > { %v4386_v36 = vsub.f32 %v4379_v20, %v4385_v35 }
 0x44a   : > { %v4387_v37 = vmul.f32 1.442695, %v4386_v36 }
 0x44c   : > { %7597 = vpow2.f32 %v4387_v37 }
 0x44e   : > { %v7596_v38 = vpop.eup %7595 }
 0x44f   : > { %v2552_v39 = vmul.f32 %v7596_v38, %v7592_v19 }
 0x451   : > { %v2554_v40 = vsel %vm1551_vm2, %v2552_v39, 0 }
 0x452   : > { %v2622_v41 = vand.u32 4294901760, %v2554_v40 }
 0x454   : > { %v2623_v43 = vsub.f32 %v2554_v40, %v2622_v41 }
 0x456   : > { %v8699_v44 = vpop.eup %7597  ;;  %v2624_v45 = vand.u32 4294901760, %v2623_v43 }
 0x457   : > { %v4389_v46 = vsel %vm1551_vm2, %v8699_v44, 0.0 }
 0x458   : > { %4390 = vadd.xlane.f32.xlu0 %v4389_v46  ;;  %v2625_v48 = vsub.f32 %v2623_v43, %v2624_v45 }
 0x45a   : > { %v2626_v49 = vand.u32 4294901760, %v2625_v48  ;;  %v5773_v48 = vld [vmem:[%s8969_s29] sm:$0xff] }
 0x45c   : > { %6927 = vmatmul.mubr.f32.vlgmr.msra.gmra.mrb[6].mxu1 %v2626_v49  ;;  %v5774_v49 = vld [vmem:[%s8969_s29 + $0x8] sm:$0xff] }
 0x45d   : > { %6930 = vmatpush3.msra.mxu1 %v2637_v51  ;;  %6931 = vmatprep.mubr.msk.f32.mxu1 %vm7915_vm0, %v7916_v1  ;;  %v5775_v51 = vld [vmem:[%s8969_s29 + $0x10] sm:$0xff] }
 0x45e   : > { %6934 = vmatprep.subr.mxu1 %v7916_v1 }
 0x464   : > { %6932 = vmatmul.mubr.f32.vlgmr.msra.gmra.mrb[6].mxu1 %v2622_v41 }
 0x465   : > { %6935 = vmatpush3.msra.mxu1 %v2634_v22  ;;  %6936 = vmatprep.mubr.msk.f32.mxu1 %vm7915_vm0, %v7916_v1 }
 0x466   : > { %6939 = vmatprep.subr.mxu1 %v7916_v1 }
 0x46c   : > { %6937 = vmatmul.mubr.f32.vlgmr.msra.gmra.mrb[6].mxu1 %v2623_v43 }
 0x46d   : > { %6940 = vmatpush3.msra.mxu1 %v8621_v26  ;;  %6941 = vmatprep.mubr.msk.f32.mxu1 %vm7915_vm0, %v7916_v1 }
 0x46e   : > { %1571 = vrot.lane.b32.xlu0 %v8609_v24, %s7917_s13  ;;  %6944 = vmatprep.subr.mxu1 %v7916_v1  ;;  %s8972_s13 = sld [smem:[#allocation35_spill]] }
 0x470   : > { %v5308_v18 = vpop.xlane.xlu0 %5307 }
 0x471   : > { %v5309_v52 = vsub.f32 %v5302_v27, %v5308_v18  ;;  %v5788_v18 = vand.u32 4294901760, %v5773_v48 }
 0x472   : > { %1581 = vrot.lane.b32.xlu0 %v8609_v24, %s7919_s17 }
 0x473   : > { %v5310_v53 = vmul.f32 1.442695, %v5309_v52  ;;  %v5791_v52 = vand.u32 4294901760, %v5774_v49 }
 0x474   : > { %6942 = vmatmul.mubr.f32.vlgmr.msra.gmra.mrb[6].mxu1 %v2624_v45 }
 0x475   : > { %7599 = vpow2.f32 %v5310_v53  ;;  %6945 = vmatpush3.msra.mxu1 %v2635_v42  ;;  %6946 = vmatprep.mubr.msk.f32.mxu1 %vm7915_vm0, %v7916_v1  ;;  %v5776_v53 = vld [vmem:[%s8969_s29 + $0x18] sm:$0xff] }
 0x476   : > { %6949 = vmatprep.subr.mxu1 %v7916_v1 }
 0x47c   : > { %6947 = vmatmul.mubr.f32.vlgmr.msra.gmra.mrb[6].mxu1 %v2622_v41 }
 0x47d   : > { %6950 = vmatpush3.msra.mxu1 %v8621_v26  ;;  %6951 = vmatprep.mubr.msk.f32.mxu1 %vm7915_vm0, %v7916_v1 }
 0x47e   : > { %6984 = vmatprep.subr.mxu1 %v7916_v1 }
 0x47f   : > { %v8724_v54 = vpop.eup %7599 }
 0x480   : > { %v5312_v24 = vsel %vm1551_vm2, %v8724_v54, 0.0 }
 0x481   : > { %5313 = vadd.xlane.f32.xlu1 %v5312_v24  ;;  %v5797_v24 = vand.u32 4294901760, %v5776_v53 }
 0x484   : > { %6952 = vmatmul.mubr.f32.vlgmr.msra.gmra.mrb[6].mxu1 %v2622_v41 }
 0x485   : > { %6986 = vmatprep.mubr.msk.f32.mxu1 %vm7915_vm0, %v7916_v1 }
 0x4b6   : > { %v3468_v57 = vpop.xlane.xlu1 %3467 }
 0x4b7   : > { %7601 = vrcp.f32 %v3468_v57  ;;  %v8802_v57 = vpack.c.bf16 %v5791_v52, %v5788_v18 }
 0x4b9   : > { %7310 = vmatpush3.bf16.msra.mxu0 %v8802_v57 }
 0x4ba   : > { %v1562_v55 = vpop.permute.xlu1 %1561  ;;  %7311 = vmatprep.subr.bf16.mxu0 %v7914_v0 }
 0x4bb   : > { %1565 = vst.msk [vmem:[#allocation3 + $0x8] sm:$0xff] %vm1551_vm2, %v1562_v55  ;;  %v5868_v55 = vsub.f32 %v5773_v48, %v5788_v18 }
 0x4c1   : > { %v7602_v26 = vpop.eup %7601 }
 0x4c2   : > { %v3470_v56 = vmul.f32 %v7602_v26, %v7594_v33  ;;  %v3006_v58 = vld [vmem:[#allocation3 + $0x8] sm:$0xff]  ;;  %v5875_v26 = vsub.f32 %v5774_v49, %v5791_v52 }
 0x4c3   : > { %v3475_v59 = vand.u32 4294901760, %v3006_v58 }
 0x4c4   : > { %v3472_v60 = vsel %vm1551_vm2, %v3470_v56, 0 }
 0x4c5   : > { %6985 = vmatpush3.msra.mxu1 %v3475_v59  ;;  %v3552_v61 = vsub.f32 %v3006_v58, %v3475_v59  ;;  %v3540_v62 = vand.u32 4294901760, %v3472_v60  ;;  %v5889_v58 = vsub.f32 %v5776_v53, %v5797_v24 }
 0x4c6   : > { %6989 = vmatprep.subr.mxu1 %v7916_v1 }
 0x4c7   : > { %v3541_v63 = vsub.f32 %v3472_v60, %v3540_v62  ;;  %v3553_v50 = vand.u32 4294901760, %v3552_v61 }
 0x4c9   : > { %v3542_v2 = vand.u32 4294901760, %v3541_v63  ;;  %v3554_v3 = vsub.f32 %v3552_v61, %v3553_v50 }
 0x4cb   : > { %v3543_v4 = vsub.f32 %v3541_v63, %v3542_v2  ;;  %v3555_v6 = vand.u32 4294901760, %v3554_v3 }
 0x4cd   : > { %v3544_v5 = vand.u32 4294901760, %v3543_v4 }
 0x4cf   : > { %6987 = vmatmul.mubr.f32.vlgmr.msra.gmra.mrb[8].mxu1 %v3544_v5 }
 0x4d0   : > { %6990 = vmatpush3.msra.mxu1 %v3555_v6  ;;  %6991 = vmatprep.mubr.msk.f32.mxu1 %vm7915_vm0, %v7916_v1  ;;  %v5890_v6 = vand.u32 4294901760, %v5889_v58 }
 0x4d1   : > { %6994 = vmatprep.subr.mxu1 %v7916_v1 }
 0x4d7   : > { %6992 = vmatmul.mubr.f32.vlgmr.msra.gmra.mrb[8].mxu1 %v3540_v62 }
 0x4d8   : > { %6995 = vmatpush3.msra.mxu1 %v3552_v61  ;;  %6996 = vmatprep.mubr.msk.f32.mxu1 %vm7915_vm0, %v7916_v1 }
 0x4d9   : > { %6999 = vmatprep.subr.mxu1 %v7916_v1 }
 0x4df   : > { %6997 = vmatmul.mubr.f32.vlgmr.msra.gmra.mrb[8].mxu1 %v3541_v63  ;;  %v5876_v63 = vand.u32 4294901760, %v5875_v26 }
 0x4e0   : > { %7000 = vmatpush3.msra.mxu1 %v3475_v59  ;;  %7001 = vmatprep.mubr.msk.f32.mxu1 %vm7915_vm0, %v7916_v1 }
 0x4e1   : > { %7004 = vmatprep.subr.mxu1 %v7916_v1 }
 0x4e5   : > { %v4391_v7 = vpop.xlane.xlu0 %4390 }
 0x4e6   : > { %7603 = vrcp.f32 %v4391_v7 }
 0x4e7   : > { %7002 = vmatmul.mubr.f32.vlgmr.msra.gmra.mrb[8].mxu1 %v3542_v2  ;;  %v5877_v2 = vsub.f32 %v5875_v26, %v5876_v63 }
 0x4e8   : > { %7005 = vmatpush3.msra.mxu1 %v3553_v50  ;;  %7006 = vmatprep.mubr.msk.f32.mxu1 %vm7915_vm0, %v7916_v1 }
 0x4e9   : > { %v1572_v8 = vpop.permute.xlu0 %1571  ;;  %7009 = vmatprep.subr.mxu1 %v7916_v1  ;;  %v5878_v4 = vand.u32 4294901760, %v5877_v2 }
 0x4ea   : > { %1575 = vst.msk [vmem:[#allocation3 + $0x10] sm:$0xff] %vm1551_vm2, %v1572_v8 }
 0x4ed   : > { %v1582_v9 = vpop.permute.xlu0 %1581 }
 0x4ee   : > { %1585 = vst.msk [vmem:[#allocation3 + $0x18] sm:$0xff] %vm1551_vm2, %v1582_v9  ;;  %v5891_v9 = vsub.f32 %v5889_v58, %v5890_v6 }
 0x4ef   : > { %7007 = vmatmul.mubr.f32.vlgmr.msra.gmra.mrb[8].mxu1 %v3540_v62 }
 0x4f0   : > { %v7604_v10 = vpop.eup %7603  ;;  %7010 = vmatpush3.msra.mxu1 %v3475_v59  ;;  %7011 = vmatprep.mubr.msk.f32.mxu1 %vm7915_vm0, %v7916_v1 }
 0x4f1   : > { %v4393_v11 = vmul.f32 %v7604_v10, %v8699_v44  ;;  %7044 = vmatprep.subr.mxu1 %v7916_v1  ;;  %v3929_v12 = vld [vmem:[#allocation3 + $0x10] sm:$0xff] }
 0x4f2   : > { %v4398_v13 = vand.u32 4294901760, %v3929_v12 }
 0x4f3   : > { %v4395_v14 = vsel %vm1551_vm2, %v4393_v11, 0  ;;  %v5892_v11 = vand.u32 4294901760, %v5891_v9 }
 0x4f4   : > { %v4475_v15 = vsub.f32 %v3929_v12, %v4398_v13  ;;  %v4463_v16 = vand.u32 4294901760, %v4395_v14 }
 0x4f5   : > { %v4852_v30 = vld [vmem:[#allocation3 + $0x18] sm:$0xff] }
 0x4f6   : > { %v4464_v19 = vsub.f32 %v4395_v14, %v4463_v16  ;;  %v4476_v20 = vand.u32 4294901760, %v4475_v15  ;;  %v5321_v32 = vand.u32 4294901760, %v4852_v30 }
 0x4f7   : > { %7012 = vmatmul.mubr.f32.vlgmr.msra.gmra.mrb[8].mxu1 %v3540_v62  ;;  %v5869_v62 = vand.u32 4294901760, %v5868_v55 }
 0x4f8   : > { %7045 = vmatpush3.msra.mxu1 %v4398_v13  ;;  %7046 = vmatprep.mubr.msk.f32.mxu1 %vm7915_vm0, %v7916_v1  ;;  %v4465_v21 = vand.u32 4294901760, %v4464_v19  ;;  %v4477_v23 = vsub.f32 %v4475_v15, %v4476_v20  ;;  %v5398_v35 = vsub.f32 %v4852_v30, %v5321_v32 }
 0x4f9   : > { %7049 = vmatprep.subr.mxu1 %v7916_v1  ;;  %v5870_v50 = vsub.f32 %v5868_v55, %v5869_v62 }
 0x4fa   : > { %v4466_v25 = vsub.f32 %v4464_v19, %v4465_v21  ;;  %v4478_v28 = vand.u32 4294901760, %v4477_v23  ;;  %v5399_v38 = vand.u32 4294901760, %v5398_v35 }
 0x4fb   : > { %v5871_v3 = vand.u32 4294901760, %v5870_v50 }
 0x4fc   : > { %v4467_v27 = vand.u32 4294901760, %v4466_v25  ;;  %v5400_v39 = vsub.f32 %v5398_v35, %v5399_v38 }
 0x4fd   : > { %v7315_v7 = vpack.c.bf16 %v5878_v4, %v5871_v3 }
 0x4fe   : > { %7047 = vmatmul.mubr.f32.vlgmr.msra.gmra.mrb[10].mxu1 %v4467_v27  ;;  %v5401_v41 = vand.u32 4294901760, %v5400_v39 }
 0x4ff   : > { %7050 = vmatpush3.msra.mxu1 %v4478_v28  ;;  %7051 = vmatprep.mubr.msk.f32.mxu1 %vm7915_vm0, %v7916_v1 }
 0x500   : > { %7054 = vmatprep.subr.mxu1 %v7916_v1 }
 0x506   : > { %7052 = vmatmul.mubr.f32.vlgmr.msra.gmra.mrb[10].mxu1 %v4463_v16 }
 0x507   : > { %7055 = vmatpush3.msra.mxu1 %v4475_v15  ;;  %7056 = vmatprep.mubr.msk.f32.mxu1 %vm7915_vm0, %v7916_v1 }
 0x508   : > { %7059 = vmatprep.subr.mxu1 %v7916_v1 }
 0x50e   : > { %v5314_v29 = vpop.xlane.xlu1 %5313  ;;  %7057 = vmatmul.mubr.f32.vlgmr.msra.gmra.mrb[10].mxu1 %v4464_v19 }
 0x50f   : > { %7605 = vrcp.f32 %v5314_v29  ;;  %7060 = vmatpush3.msra.mxu1 %v4398_v13  ;;  %7061 = vmatprep.mubr.msk.f32.mxu1 %vm7915_vm0, %v7916_v1 }
 0x510   : > { %7064 = vmatprep.subr.mxu1 %v7916_v1 }
 0x516   : > { %7062 = vmatmul.mubr.f32.vlgmr.msra.gmra.mrb[10].mxu1 %v4465_v21 }
 0x517   : > { %7065 = vmatpush3.msra.mxu1 %v4476_v20  ;;  %7066 = vmatprep.mubr.msk.f32.mxu1 %vm7915_vm0, %v7916_v1 }
 0x518   : > { %7069 = vmatprep.subr.mxu1 %v7916_v1 }
 0x519   : > { %v7606_v31 = vpop.eup %7605 }
 0x51a   : > { %v5316_v33 = vmul.f32 %v7606_v31, %v8724_v54  ;;  %v5794_v54 = vand.u32 4294901760, %v5775_v51 }
 0x51c   : > { %v5318_v17 = vsel %vm1551_vm2, %v5316_v33, 0  ;;  %v5882_v56 = vsub.f32 %v5775_v51, %v5794_v54  ;;  %v8805_v59 = vpack.c.bf16 %v5797_v24, %v5794_v54 }
 0x51d   : > { %v5386_v34 = vand.u32 4294901760, %v5318_v17 }
 0x51e   : > { %7067 = vmatmul.mubr.f32.vlgmr.msra.gmra.mrb[10].mxu1 %v4463_v16  ;;  %7313 = vmatpush3.bf16.msra.mxu0 %v8805_v59  ;;  %v5883_v5 = vand.u32 4294901760, %v5882_v56  ;;  %v7324_v14 = vpack.c.bf16 %v5889_v58, %v5882_v56 }
 0x51f   : > { %7070 = vmatpush3.msra.mxu1 %v4398_v13  ;;  %7071 = vmatprep.mubr.msk.f32.mxu1 %vm7915_vm0, %v7916_v1  ;;  %v5387_v36 = vsub.f32 %v5318_v17, %v5386_v34  ;;  %v7321_v13 = vpack.c.bf16 %v5875_v26, %v5868_v55 }
 0x520   : > { %7104 = vmatprep.subr.mxu1 %v7916_v1  ;;  %7314 = vmatprep.subr.bf16.mxu0 %v7914_v0  ;;  %v5884_v8 = vsub.f32 %v5882_v56, %v5883_v5  ;;  %v7336_v19 = vpack.c.bf16 %v5890_v6, %v5883_v5 }
 0x521   : > { %v5388_v37 = vand.u32 4294901760, %v5387_v36 }
 0x522   : > { %v5885_v10 = vand.u32 4294901760, %v5884_v8 }
 0x523   : > { %v5389_v22 = vsub.f32 %v5387_v36, %v5388_v37 }
 0x524   : > { %v7318_v12 = vpack.c.bf16 %v5892_v11, %v5885_v10 }
 0x525   : > { %v5390_v40 = vand.u32 4294901760, %v5389_v22 }
 0x526   : > { %7072 = vmatmul.mubr.f32.vlgmr.msra.gmra.mrb[10].mxu1 %v4463_v16  ;;  %v7333_v16 = vpack.c.bf16 %v5876_v63, %v5869_v62 }
 0x527   : > { %7105 = vmatpush3.msra.mxu1 %v5321_v32  ;;  %7106 = vmatprep.mubr.msk.f32.mxu1 %vm7915_vm0, %v7916_v1 }
 0x528   : > { %7109 = vmatprep.subr.mxu1 %v7916_v1 }
 0x52a   : > { %7107 = vmatmul.mubr.f32.vlgmr.msra.gmra.mrb[12].mxu1 %v5390_v40 }
 0x52b   : > { %7110 = vmatpush3.msra.mxu1 %v5401_v41  ;;  %7111 = vmatprep.mubr.msk.f32.mxu1 %vm7915_vm0, %v7916_v1 }
 0x52c   : > { %7114 = vmatprep.subr.mxu1 %v7916_v1 }
 0x532   : > { %7112 = vmatmul.mubr.f32.vlgmr.msra.gmra.mrb[12].mxu1 %v5386_v34 }
 0x533   : > { %7115 = vmatpush3.msra.mxu1 %v5398_v35  ;;  %7116 = vmatprep.mubr.msk.f32.mxu1 %vm7915_vm0, %v7916_v1 }
 0x534   : > { %7119 = vmatprep.subr.mxu1 %v7916_v1 }
 0x53a   : > { %7117 = vmatmul.mubr.f32.vlgmr.msra.gmra.mrb[12].mxu1 %v5387_v36 }
 0x53b   : > { %7120 = vmatpush3.msra.mxu1 %v5321_v32  ;;  %7121 = vmatprep.mubr.msk.f32.mxu1 %vm7915_vm0, %v7916_v1 }
 0x53c   : > { %7124 = vmatprep.subr.mxu1 %v7916_v1 }
 0x542   : > { %7122 = vmatmul.mubr.f32.vlgmr.msra.gmra.mrb[12].mxu1 %v5388_v37 }
 0x543   : > { %7125 = vmatpush3.msra.mxu1 %v5399_v38  ;;  %7126 = vmatprep.mubr.msk.f32.mxu1 %vm7915_vm0, %v7916_v1 }
 0x544   : > { %7129 = vmatprep.subr.mxu1 %v7916_v1 }
 0x54a   : > { %7127 = vmatmul.mubr.f32.vlgmr.msra.gmra.mrb[12].mxu1 %v5386_v34 }
 0x54b   : > { %7130 = vmatpush3.msra.mxu1 %v5321_v32  ;;  %7131 = vmatprep.mubr.msk.f32.mxu1 %vm7915_vm0, %v7916_v1  ;;  %v6475_v32 = vld [vmem:[%s8972_s13] ss:$0 sm:$0xff] }
 0x552   : > { %7132 = vmatmul.mubr.f32.vlgmr.msra.gmra.mrb[12].mxu1 %v5386_v34 }
 0x557   : > { %v2998_v42 = vpop.f32.mrb[6].mxu1 }
 0x558   : > { %3002 = vst.msk [vmem:[#allocation4] sm:$0xff] %vm1551_vm2, %v2998_v42  ;;  %v6953_v43 = vpop.f32.mrb[7].mxu1 }
 0x5ca   : > { %v3916_v44 = vpop.f32.mrb[8].mxu1 }
 0x5cb   : > { %3921 = vrot.lane.b32.xlu0 %v3916_v44, %s7920_s30  ;;  %v7013_v45 = vpop.f32.mrb[9].mxu1 }
 0x5f9   : > { %v4839_v46 = vpop.f32.mrb[10].mxu1 }
 0x5fa   : > { %4844 = vrot.lane.b32.xlu0 %v4839_v46, %s7921_s26  ;;  %v7073_v47 = vpop.f32.mrb[11].mxu1  ;;  %s8973_s26 = sld [smem:[#allocation36_spill]] }
 0x600   : > { %s8842_s9 = scalar_lea.hbm %s8973_s26, %s6477_s14 }
 0x625   : > { %v5762_v60 = vpop.f32.mrb[12].mxu1 }
 0x626   : > { %5767 = vrot.lane.b32.xlu0 %v5762_v60, %s7922_s12  ;;  %v7133_v61 = vpop.f32.mrb[13].mxu1 }
 0x63d   : > { %v3922_v15 = vpop.permute.xlu0 %3921 }
 0x63e   : > { %3925 = vst.msk [vmem:[#allocation4] sm:$0xff] %vm3924_vm3, %v3922_v15 }
 0x66c   : > { %v4845_v20 = vpop.permute.xlu0 %4844 }
 0x66d   : > { %4848 = vst.msk [vmem:[#allocation4] sm:$0xff] %vm4847_vm4, %v4845_v20 }
 0x698   : > { %v5768_v21 = vpop.permute.xlu0 %5767 }
 0x699   : > { %5771 = vst.msk [vmem:[#allocation4] sm:$0xff] %vm5770_vm5, %v5768_v21 }
 0x6a0   : > { %v5772_v23 = vld [vmem:[#allocation4] sm:$0xff] }
 0x6a1   : > { %v5785_v25 = vsel %vm562_vm1, %v5772_v23, 0 }
 0x6a2   : > { %v5856_v27 = vand.u32 4294901760, %v5785_v25 }
 0x6a4   : > { %v5857_v28 = vsub.f32 %v5785_v25, %v5856_v27 }
 0x6a6   : > { %v5858_v29 = vand.u32 4294901760, %v5857_v28 }
 0x6a8   : > { %v5859_v30 = vsub.f32 %v5857_v28, %v5858_v29 }
 0x6aa   : > { %v5860_v31 = vand.u32 4294901760, %v5859_v30 }
 0x6ac   : > { %7143 = vmatmul.mubr.f32.vlgmr.msra.gmra.mrb[10].mxu0 %v5860_v31 }
 0x6ad   : > { %7316 = vmatpush3.bf16.msra.mxu0 %v7315_v7  ;;  %7153 = vmatprep.mubr.msk.f32.mxu0 %vm7915_vm0, %v7916_v1 }
 0x6ae   : > { %7317 = vmatprep.subr.bf16.mxu0 %v7914_v0 }
 0x6b1   : > { %7319 = vmatpush3.bf16.msra.mxu0 %v7318_v12 }
 0x6b2   : > { %7320 = vmatprep.subr.bf16.mxu0 %v7914_v0 }
 0x6b4   : > { %7154 = vmatmul.mubr.f32.vlgmr.msra.gmra.mrb[10].mxu0 %v5856_v27 }
 0x6b5   : > { %7322 = vmatpush3.bf16.msra.mxu0 %v7321_v13  ;;  %7164 = vmatprep.mubr.msk.f32.mxu0 %vm7915_vm0, %v7916_v1 }
 0x6b6   : > { %7323 = vmatprep.subr.bf16.mxu0 %v7914_v0 }
 0x6b9   : > { %7325 = vmatpush3.bf16.msra.mxu0 %v7324_v14 }
 0x6ba   : > { %7326 = vmatprep.subr.bf16.mxu0 %v7914_v0 }
 0x6bc   : > { %7165 = vmatmul.mubr.f32.vlgmr.msra.gmra.mrb[10].mxu0 %v5857_v28 }
 0x6bd   : > { %7328 = vmatpush3.bf16.msra.mxu0 %v8802_v57  ;;  %7175 = vmatprep.mubr.msk.f32.mxu0 %vm7915_vm0, %v7916_v1 }
 0x6be   : > { %7329 = vmatprep.subr.bf16.mxu0 %v7914_v0 }
 0x6c1   : > { %7331 = vmatpush3.bf16.msra.mxu0 %v8805_v59 }
 0x6c2   : > { %7332 = vmatprep.subr.bf16.mxu0 %v7914_v0 }
 0x6c4   : > { %7176 = vmatmul.mubr.f32.vlgmr.msra.gmra.mrb[10].mxu0 %v5858_v29 }
 0x6c5   : > { %7334 = vmatpush3.bf16.msra.mxu0 %v7333_v16  ;;  %7186 = vmatprep.mubr.msk.f32.mxu0 %vm7915_vm0, %v7916_v1 }
 0x6c6   : > { %7335 = vmatprep.subr.bf16.mxu0 %v7914_v0 }
 0x6c9   : > { %7337 = vmatpush3.bf16.msra.mxu0 %v7336_v19 }
 0x6ca   : > { %7338 = vmatprep.subr.bf16.mxu0 %v7914_v0 }
 0x6cc   : > { %7187 = vmatmul.mubr.f32.vlgmr.msra.gmra.mrb[10].mxu0 %v5856_v27 }
 0x6cd   : > { %7340 = vmatpush3.bf16.msra.mxu0 %v8802_v57  ;;  %7197 = vmatprep.mubr.msk.f32.mxu0 %vm7915_vm0, %v7916_v1 }
 0x6ce   : > { %7341 = vmatprep.subr.bf16.mxu0 %v7914_v0 }
 0x6d1   : > { %7343 = vmatpush3.bf16.msra.mxu0 %v8805_v59 }
 0x6d4   : > { %7198 = vmatmul.mubr.f32.vlgmr.msra.gmra.mrb[10].mxu0 %v5856_v27 }
 0x7a7   : > { %v6268_v33 = vpop.f32.mrb[10].mxu0 }
 0x7a8   : > { %v7348_v17 = vadd.f32 %v6475_v32, %v6268_v33  ;;  %v7199_v34 = vpop.f32.mrb[11].mxu0 }
 0x7aa   : > { %6272 = vst.msk [vmem:[%s545_s22] sm:$0xff] %vm562_vm1, %v7348_v17 }
 0x7ab   : > { %7822 = shalt.err (!%p7819_p11)
}
 0x7ac   : > { %s7823_s21 = scalar_lea.hbm %s8842_s9, 128  ;;  %s7827_s24 = scalar_lea.hbm %s8973_s26, 256 }
 0x7ad   : > { %p7824_p5 = scmp.ne.s32.totalorder %s8842_s9, %s7823_s21  ;;  %p7828_p0 = scmp.lt.u32.totalorder %s8842_s9, %s8973_s26 }
 0x7ae   : > { %p7829_p4 = scmp.lt.u32.totalorder %s7827_s24, %s7823_s21  ;;  %p7831_p13 = scmp.lt.u32.totalorder %s7823_s21, %s8842_s9 }
 0x7af   : > { %p7825_p3 = pnand %p7824_p5, %p8974_p2 }
 0x7b0   : > { %p7830_p10 = por %p7829_p4, %p7828_p0 }
 0x7b1   : > { %p7826_p6 = pneg %p7825_p3 }
 0x7b2   : > { %p7832_p1 = por %p7831_p13, %p7830_p10 }
 0x7b4   : > { %p7833_p12 = pnand %p7832_p1, %p7826_p6 }
 0x7b6   : > { %7836 = shalt.err (!%p7833_p12)
}
 0x7b7   : > { %7489 = dma.vmem_to_hbm [thread:$0]  (%p8974_p2), %s8844_s3, 128, %s8842_s9, %s6274_s16  }
 0x7b8 PF: > { %s8975_s23 = sld [smem:[#allocation23_spill]]  ;;  %s8976_s25 = sld [smem:[#allocation30_spill]] }
 0x7b9   : > { %s8977_s13 = sld [smem:[#allocation26_spill]] }
 0x7be   : > { %s6300_s14 = sand.u32 1, %s8975_s23   ;;  %p8978_p8 = scmp.ne.s32.totalorder %s8976_s25, 0 }
 0x7bf   : > { %p8979_p9 = scmp.ge.s32.totalorder %s8977_s13, 2  ;;  %s6301_s22 = scalar_lea.sflag [#allocation7], %s6300_s14 }
 0x7c1   : > { %p7515_p7 = pnand %p8979_p9, %p8978_p8 }
 0x7c3   : > { %7878 = dma.done.wait (!%p7515_p7), %s6301_s22, 128  }
 0x7c4   : > { %7880 = vsyncadd (!%p7515_p7), %s6301_s22, 4294967168  ;;  %s32_s22 = sadd.s32 1, %s8977_s13   ;;  %s8980_s11 = sld [smem:[#allocation29_spill]] }
 0x7c5   : > { %p29_p11 = scmp.ge.s32.totalorder %s32_s22, 4   ;;  %s8981_s20 = sld [smem:[#allocation25_spill]] }
 0x7c6   : > { %s8982_s21 = sld [smem:[#allocation27_spill]]  ;;  %s8983_s17 = smov %s7887_s18 }
 0x7c7   : > { %s8984_s18 = smov %s7891_s19  ;;  %31 = sbr.rel (!%p29_p11) target bundleno = 17 (0x11), region = 165 }
 0x7ca   : > { %s8985_s19 = smov %s8980_s11 }
 0x7ce   :  { %6306 = vsyncpa [#allocation6], 1 }
 0x7cf   :  { %6308 = vsyncpa [#allocation6 + $0x1], 1 }
 0x7d0   :  { %6309 = vsyncpa [#allocation9], 1 }
 0x7d1   :  { %6311 = vsyncpa [#allocation9 + $0x1], 1 }
 0x7d2   :  { %6312 = vsyncpa [#allocation12], 1 }
 0x7d3   :  { %6313 = vsyncpa [#allocation15], 1 }
 0x7d4   :  { %6314 = vsyncpa [#allocation7], 1 }
 0x7d5   :  { %6316 = vsyncpa [#allocation7 + $0x1], 1 }

</bundles_post_ra>
